<compile_context>
chip_gen: v7x
topology: tpu7x:2x2x1
jax: 0.10.0
libtpu: 0.0.40
codegen_flags: <defaults>
</compile_context>

<pallas_src>
import jax
import jax.numpy as jnp
from jax import lax
from jax.experimental import pallas as pl
from jax.experimental.pallas import tpu as pltpu

_BN_EPS = 1e-5


# ----------------------------- Pallas kernel --------------------------------

def _masked_attention_kernel(cf_ref, f_ref, mask_ref,
                             wq_ref, bq_ref, wk_ref, bk_ref, o_ref):
    # cf_ref   : (1, M, Cin)  cent_feat slab for this batch element
    # f_ref    : (1, N, Cin)  feat slab
    # mask_ref : (1, M, N)
    # wq/wk    : (Cin, H)     1x1 conv weights with train-mode BN folded in
    # bq/bk    : (1, H)       folded BN bias
    # o_ref    : (1, M, N)    adj
    cf = cf_ref[0]
    ft = f_ref[0]
    mask = mask_ref[0]

    # 1x1 conv + folded BatchNorm (train-mode batch stats, gamma=1, beta=0).
    q = jnp.dot(cf, wq_ref[...], preferred_element_type=jnp.float32) + bq_ref[...]
    k = jnp.dot(ft, wk_ref[...], preferred_element_type=jnp.float32) + bk_ref[...]

    # Scores (M, N) = q @ k^T  — bf16 operands, f32 accumulation on the MXU.
    s = lax.dot_general(q.astype(jnp.bfloat16), k.astype(jnp.bfloat16),
                        (((1,), (1,)), ((), ())),
                        preferred_element_type=jnp.float32)

    # masked_fill(mask < 1e-9, -1e9) + softmax over the neighbor/point axis N.
    s = jnp.where(mask < 1e-9, jnp.float32(-1e9), s)
    m = jnp.max(s, axis=-1, keepdims=True)
    e = jnp.exp(s - m)
    adj = e * pl.reciprocal(jnp.sum(e, axis=-1, keepdims=True), approx=True)

    # sqrt(mask + eps) * sqrt(adj + eps) - eps
    adj = jnp.sqrt(mask + 1e-9) * jnp.sqrt(adj + 1e-9) - 1e-9

    # F.normalize(p=1, dim=1)  -> over M (axis 0 of the slab)
    n1 = jnp.maximum(jnp.sum(jnp.abs(adj), axis=0, keepdims=True), 1e-12)
    adj = adj * pl.reciprocal(n1, approx=True)
    # F.normalize(p=1, dim=-1) -> over N (axis 1 of the slab)
    n2 = jnp.maximum(jnp.sum(jnp.abs(adj), axis=1, keepdims=True), 1e-12)
    adj = adj * pl.reciprocal(n2, approx=True)

    o_ref[0] = adj.astype(o_ref.dtype)


# ----------------------------- Pallas wrapper --------------------------------

def masked_attention_pallas(cent_feat, feat, mask, wq_eff, bq_eff, wk_eff, bk_eff):
    B, M, Cin = cent_feat.shape
    N = feat.shape[1]
    H = wq_eff.shape[1]
    return pl.pallas_call(
        _masked_attention_kernel,
        out_shape=jax.ShapeDtypeStruct((B, M, N), jnp.float32),
        grid=(B,),
        in_specs=[
            pl.BlockSpec((1, M, Cin), lambda b: (b, 0, 0)),
            pl.BlockSpec((1, N, Cin), lambda b: (b, 0, 0)),
            pl.BlockSpec((1, M, N), lambda b: (b, 0, 0)),
            pl.BlockSpec((Cin, H), lambda b: (0, 0)),
            pl.BlockSpec((1, H), lambda b: (0, 0)),
            pl.BlockSpec((Cin, H), lambda b: (0, 0)),
            pl.BlockSpec((1, H), lambda b: (0, 0)),
        ],
        out_specs=pl.BlockSpec((1, M, N), lambda b: (b, 0, 0)),
        compiler_params=pltpu.CompilerParams(
            dimension_semantics=("parallel",)),
    )(cent_feat, feat, mask, wq_eff, bq_eff, wk_eff, bk_eff)


# ---------------------- BatchNorm (train mode) folding -----------------------

def _fold_conv_bn_train(x, w):
    """Fold Conv1d(k=1, bias=False) + BatchNorm1d (train mode, gamma=1, beta=0)
    into an affine (W_eff (Cin,H), b_eff (1,H)).

    The BN batch statistics of y = x @ W^T over the (batch, length) axes are
    computed analytically from x and W via the second-moment matrix of x, so no
    extra HBM round-trip of the projected features is needed.
    """
    B, L, Cin = x.shape
    x2 = x.reshape(B * L, Cin).astype(jnp.float32)
    mu_x = jnp.mean(x2, axis=0)                        # (Cin,)
    sxx = jnp.matmul(x2.T, x2) / (B * L)               # (Cin, Cin)   E[x x^T]
    mu_y = w @ mu_x                                    # (H,)  batch mean of y
    ey2 = jnp.einsum('hc,cd,hd->h', w, sxx, w)         # (H,)  E[y^2]
    var_y = jnp.maximum(ey2 - mu_y * mu_y, 0.0)        # biased variance
    inv = lax.rsqrt(var_y + _BN_EPS)
    w_eff = (w * inv[:, None]).T                       # (Cin, H)
    b_eff = (-mu_y * inv).reshape(1, -1)               # (1, H)
    return w_eff, b_eff


@jax.jit
def masked_attention_forward(cent_feat, feat, mask, wq, wk):
    """cent_feat: (B, M, C+3), feat: (B, N, C+3), mask: (B, M, N),
    wq/wk: torch-layout Conv1d weights (H, C+3).  Returns adj (B, M, N)."""
    wq_eff, bq_eff = _fold_conv_bn_train(cent_feat, wq)
    wk_eff, bk_eff = _fold_conv_bn_train(feat, wk)
    return masked_attention_pallas(
        cent_feat.astype(jnp.float32), feat.astype(jnp.float32),
        mask.astype(jnp.float32), wq_eff, bq_eff, wk_eff, bk_eff)


# ----------------------------- main -------------------------------------------

if __name__ == "__main__":
    B, C, M, N, H = 2, 16, 64, 256, 128       # hid_channels default = 128
    Cin = C + 3

    key = jax.random.PRNGKey(0)
    k1, k2, k3, k4, k5 = jax.random.split(key, 5)
    cent_feat = jax.random.normal(k1, (B, M, Cin), jnp.float32)
    feat = jax.random.normal(k2, (B, N, Cin), jnp.float32)
    mask = (jax.random.uniform(k3, (B, M, N)) > 0.3).astype(jnp.float32)

    # xavier_normal_ init of the 1x1 conv weights, torch layout (H, Cin).
    std = (2.0 / (Cin + H)) ** 0.5
    wq = std * jax.random.normal(k4, (H, Cin), jnp.float32)
    wk = std * jax.random.normal(k5, (H, Cin), jnp.float32)

    adj = masked_attention_forward(cent_feat, feat, mask, wq, wk)
    adj = jax.block_until_ready(adj)
    assert adj.shape == (B, M, N)
    assert bool(jnp.all(jnp.isfinite(adj)))
    print("KERNEL_OK")
</pallas_src>

<mosaic_0001>
module attributes {stable_mosaic.version = 11 : i64} {
  func.func @_masked_attention_kernel(%arg0: i32, %arg1: memref<1x64x19xf32, #tpu.memory_space<vmem>>, %arg2: memref<1x256x19xf32, #tpu.memory_space<vmem>>, %arg3: memref<1x64x256xf32, #tpu.memory_space<vmem>>, %arg4: memref<19x128xf32, #tpu.memory_space<vmem>>, %arg5: memref<1x128xf32, #tpu.memory_space<vmem>>, %arg6: memref<19x128xf32, #tpu.memory_space<vmem>>, %arg7: memref<1x128xf32, #tpu.memory_space<vmem>>, %arg8: memref<1x64x256xf32, #tpu.memory_space<vmem>>) attributes {dimension_semantics = [#tpu.dimension_semantics<parallel>], iteration_bounds = array<i64: 2>, scalar_prefetch = 0 : i64, scratch_operands = 0 : i64, tpu.core_type = #tpu.core_type<tc>, window_params = [{transform_indices = @transform_0, window_bounds = array<i64: 1, 64, 19>}, {transform_indices = @transform_1, window_bounds = array<i64: 1, 256, 19>}, {transform_indices = @transform_2, window_bounds = array<i64: 1, 64, 256>}, {pipeline_mode = #tpu.pipeline_mode<synchronous>, transform_indices = @transform_3, window_bounds = array<i64: 19, 128>}, {pipeline_mode = #tpu.pipeline_mode<synchronous>, transform_indices = @transform_4, window_bounds = array<i64: 1, 128>}, {pipeline_mode = #tpu.pipeline_mode<synchronous>, transform_indices = @transform_5, window_bounds = array<i64: 19, 128>}, {pipeline_mode = #tpu.pipeline_mode<synchronous>, transform_indices = @transform_6, window_bounds = array<i64: 1, 128>}, {transform_indices = @transform_7, window_bounds = array<i64: 1, 64, 256>}]} {
    %c0 = arith.constant 0 : index
    %c0_0 = arith.constant 0 : index
    %c0_1 = arith.constant 0 : index
    %0 = vector.load %arg1[%c0, %c0_0, %c0_1] : memref<1x64x19xf32, #tpu.memory_space<vmem>>, vector<1x64x19xf32>
    %1 = vector.shape_cast %0 : vector<1x64x19xf32> to vector<64x19xf32>
    %c0_2 = arith.constant 0 : index
    %c0_3 = arith.constant 0 : index
    %c0_4 = arith.constant 0 : index
    %2 = vector.load %arg2[%c0_2, %c0_3, %c0_4] : memref<1x256x19xf32, #tpu.memory_space<vmem>>, vector<1x256x19xf32>
    %3 = vector.shape_cast %2 : vector<1x256x19xf32> to vector<256x19xf32>
    %c0_5 = arith.constant 0 : index
    %c0_6 = arith.constant 0 : index
    %c0_7 = arith.constant 0 : index
    %4 = vector.load %arg3[%c0_5, %c0_6, %c0_7] : memref<1x64x256xf32, #tpu.memory_space<vmem>>, vector<1x64x256xf32>
    %5 = vector.shape_cast %4 : vector<1x64x256xf32> to vector<64x256xf32>
    %c0_8 = arith.constant 0 : index
    %c0_9 = arith.constant 0 : index
    %6 = vector.load %arg4[%c0_8, %c0_9] : memref<19x128xf32, #tpu.memory_space<vmem>>, vector<19x128xf32>
    %cst = arith.constant dense<0.000000e+00> : vector<64x128xf32>
    %7 = tpu.matmul %1, %6, %cst {dimension_numbers = #tpu.dot_dimension_numbers<[1], [0], [0], [1], [0, 0, 1, 1], [], []>} : vector<64x19xf32>, vector<19x128xf32>, vector<64x128xf32> -> vector<64x128xf32>
    %c0_10 = arith.constant 0 : index
    %c0_11 = arith.constant 0 : index
    %8 = vector.load %arg5[%c0_10, %c0_11] : memref<1x128xf32, #tpu.memory_space<vmem>>, vector<1x128xf32>
    %9 = vector.broadcast %8 : vector<1x128xf32> to vector<64x128xf32>
    %10 = arith.addf %7, %9 : vector<64x128xf32>
    %c0_12 = arith.constant 0 : index
    %c0_13 = arith.constant 0 : index
    %11 = vector.load %arg6[%c0_12, %c0_13] : memref<19x128xf32, #tpu.memory_space<vmem>>, vector<19x128xf32>
    %cst_14 = arith.constant dense<0.000000e+00> : vector<256x128xf32>
    %12 = tpu.matmul %3, %11, %cst_14 {dimension_numbers = #tpu.dot_dimension_numbers<[1], [0], [0], [1], [0, 0, 1, 1], [], []>} : vector<256x19xf32>, vector<19x128xf32>, vector<256x128xf32> -> vector<256x128xf32>
    %c0_15 = arith.constant 0 : index
    %c0_16 = arith.constant 0 : index
    %13 = vector.load %arg7[%c0_15, %c0_16] : memref<1x128xf32, #tpu.memory_space<vmem>>, vector<1x128xf32>
    %14 = vector.broadcast %13 : vector<1x128xf32> to vector<256x128xf32>
    %15 = arith.addf %12, %14 : vector<256x128xf32>
    %16 = arith.truncf %10 : vector<64x128xf32> to vector<64x128xbf16>
    %17 = arith.truncf %15 : vector<256x128xf32> to vector<256x128xbf16>
    %cst_17 = arith.constant dense<0.000000e+00> : vector<64x256xf32>
    %18 = tpu.matmul %16, %17, %cst_17 {dimension_numbers = #tpu.dot_dimension_numbers<[1], [1], [0], [0], [0, 0, 1, 0], [], []>} : vector<64x128xbf16>, vector<256x128xbf16>, vector<64x256xf32> -> vector<64x256xf32>
    %cst_18 = arith.constant 9.99999971E-10 : f32
    %19 = vector.broadcast %cst_18 : f32 to vector<64x256xf32>
    %20 = arith.cmpf olt, %5, %19 : vector<64x256xf32>
    %cst_19 = arith.constant -1.000000e+09 : f32
    %21 = vector.broadcast %cst_19 : f32 to vector<64x256xf32>
    %22 = arith.select %20, %21, %18 : vector<64x256xi1>, vector<64x256xf32>
    %cst_20 = arith.constant dense<0xFF800000> : vector<64xf32>
    %23 = vector.multi_reduction <maximumf>, %22, %cst_20 [1] : vector<64x256xf32> to vector<64xf32>
    %24 = vector.shape_cast %23 : vector<64xf32> to vector<64x1xf32>
    %25 = vector.broadcast %24 : vector<64x1xf32> to vector<64x256xf32>
    %26 = arith.subf %22, %25 : vector<64x256xf32>
    %27 = math.exp %26 : vector<64x256xf32>
    %cst_21 = arith.constant dense<0.000000e+00> : vector<64xf32>
    %28 = vector.multi_reduction <add>, %27, %cst_21 [1] : vector<64x256xf32> to vector<64xf32>
    %29 = vector.shape_cast %28 : vector<64xf32> to vector<64x1xf32>
    %30 = tpu.reciprocal %29 {approx = true} : vector<64x1xf32> -> vector<64x1xf32>
    %31 = vector.broadcast %30 : vector<64x1xf32> to vector<64x256xf32>
    %32 = arith.mulf %27, %31 : vector<64x256xf32>
    %cst_22 = arith.constant 9.99999971E-10 : f32
    %33 = vector.broadcast %cst_22 : f32 to vector<64x256xf32>
    %34 = arith.addf %5, %33 : vector<64x256xf32>
    %35 = math.sqrt %34 : vector<64x256xf32>
    %cst_23 = arith.constant 9.99999971E-10 : f32
    %36 = vector.broadcast %cst_23 : f32 to vector<64x256xf32>
    %37 = arith.addf %32, %36 : vector<64x256xf32>
    %38 = math.sqrt %37 : vector<64x256xf32>
    %39 = arith.mulf %35, %38 : vector<64x256xf32>
    %cst_24 = arith.constant 9.99999971E-10 : f32
    %40 = vector.broadcast %cst_24 : f32 to vector<64x256xf32>
    %41 = arith.subf %39, %40 : vector<64x256xf32>
    %42 = math.absf %41 : vector<64x256xf32>
    %cst_25 = arith.constant dense<0.000000e+00> : vector<256xf32>
    %43 = vector.multi_reduction <add>, %42, %cst_25 [0] : vector<64x256xf32> to vector<256xf32>
    %44 = vector.shape_cast %43 : vector<256xf32> to vector<1x256xf32>
    %cst_26 = arith.constant 9.99999996E-13 : f32
    %45 = vector.broadcast %cst_26 : f32 to vector<1x256xf32>
    %46 = arith.maximumf %44, %45 : vector<1x256xf32>
    %47 = tpu.reciprocal %46 {approx = true} : vector<1x256xf32> -> vector<1x256xf32>
    %48 = vector.broadcast %47 : vector<1x256xf32> to vector<64x256xf32>
    %49 = arith.mulf %41, %48 : vector<64x256xf32>
    %50 = math.absf %49 : vector<64x256xf32>
    %cst_27 = arith.constant dense<0.000000e+00> : vector<64xf32>
    %51 = vector.multi_reduction <add>, %50, %cst_27 [1] : vector<64x256xf32> to vector<64xf32>
    %52 = vector.shape_cast %51 : vector<64xf32> to vector<64x1xf32>
    %cst_28 = arith.constant 9.99999996E-13 : f32
    %53 = vector.broadcast %cst_28 : f32 to vector<64x1xf32>
    %54 = arith.maximumf %52, %53 : vector<64x1xf32>
    %55 = tpu.reciprocal %54 {approx = true} : vector<64x1xf32> -> vector<64x1xf32>
    %56 = vector.broadcast %55 : vector<64x1xf32> to vector<64x256xf32>
    %57 = arith.mulf %49, %56 : vector<64x256xf32>
    %c0_29 = arith.constant 0 : index
    %c0_30 = arith.constant 0 : index
    %c0_31 = arith.constant 0 : index
    %58 = vector.load %arg8[%c0_29, %c0_30, %c0_31] : memref<1x64x256xf32, #tpu.memory_space<vmem>>, vector<1x64x256xf32>
    %59 = vector.shape_cast %58 : vector<1x64x256xf32> to vector<64x256xf32>
    %60 = vector.shape_cast %57 : vector<64x256xf32> to vector<1x64x256xf32>
    tpu.vector_store %arg8[%c0_29, %c0_30, %c0_31], %60 {strides = array<i32>} : memref<1x64x256xf32, #tpu.memory_space<vmem>>, vector<1x64x256xf32>,
    return
  }
  func.func @transform_0(%arg0: i32) -> (i32, i32, i32) {
    %c0_i32 = arith.constant 0 : i32
    %c0_i32_0 = arith.constant 0 : i32
    %c0_i32_1 = arith.constant 0 : i32
    return %arg0, %c0_i32, %c0_i32_0 : i32, i32, i32
  }
  func.func @transform_1(%arg0: i32) -> (i32, i32, i32) {
    %c0_i32 = arith.constant 0 : i32
    %c0_i32_0 = arith.constant 0 : i32
    %c0_i32_1 = arith.constant 0 : i32
    return %arg0, %c0_i32, %c0_i32_0 : i32, i32, i32
  }
  func.func @transform_2(%arg0: i32) -> (i32, i32, i32) {
    %c0_i32 = arith.constant 0 : i32
    %c0_i32_0 = arith.constant 0 : i32
    %c0_i32_1 = arith.constant 0 : i32
    return %arg0, %c0_i32, %c0_i32_0 : i32, i32, i32
  }
  func.func @transform_3(%arg0: i32) -> (i32, i32) {
    %c0_i32 = arith.constant 0 : i32
    %c0_i32_0 = arith.constant 0 : i32
    %c0_i32_1 = arith.constant 0 : i32
    return %c0_i32, %c0_i32_0 : i32, i32
  }
  func.func @transform_4(%arg0: i32) -> (i32, i32) {
    %c0_i32 = arith.constant 0 : i32
    %c0_i32_0 = arith.constant 0 : i32
    %c0_i32_1 = arith.constant 0 : i32
    return %c0_i32, %c0_i32_0 : i32, i32
  }
  func.func @transform_5(%arg0: i32) -> (i32, i32) {
    %c0_i32 = arith.constant 0 : i32
    %c0_i32_0 = arith.constant 0 : i32
    %c0_i32_1 = arith.constant 0 : i32
    return %c0_i32, %c0_i32_0 : i32, i32
  }
  func.func @transform_6(%arg0: i32) -> (i32, i32) {
    %c0_i32 = arith.constant 0 : i32
    %c0_i32_0 = arith.constant 0 : i32
    %c0_i32_1 = arith.constant 0 : i32
    return %c0_i32, %c0_i32_0 : i32, i32
  }
  func.func @transform_7(%arg0: i32) -> (i32, i32, i32) {
    %c0_i32 = arith.constant 0 : i32
    %c0_i32_0 = arith.constant 0 : i32
    %c0_i32_1 = arith.constant 0 : i32
    return %arg0, %c0_i32, %c0_i32_0 : i32, i32, i32
  }
}

</mosaic_0001>

<bundles_post_ra>
// kernel: masked_attention_forward.1
= control target key start
LH: loop header
LB: loop body
LE: loop exit
PB: predicated region body
PF: predicated region fallthrough
CT: control target
= control target key end

     0   :  { %12 = vsyncpa [#allocation3], 0  ;;  %s3231_s0 = inlined_call_operand.vmem [shape: f32[2,64,19], index: 0, kind: input, shape index: {}]   ;;  %s3232_s1 = inlined_call_operand.vmem [shape: f32[2,256,19], index: 1, kind: input, shape index: {}]   ;;  %s3233_s2 = inlined_call_operand.vmem [shape: f32[2,64,256], index: 2, kind: input, shape index: {}]   ;;  %s3234_s3 = inlined_call_operand.vmem [shape: f32[19,128], index: 3, kind: input, shape index: {}]   ;;  %s3235_s4 = inlined_call_operand.vmem [shape: f32[1,128], index: 4, kind: input, shape index: {}]   ;;  %s3236_s5 = inlined_call_operand.vmem [shape: f32[19,128], index: 5, kind: input, shape index: {}]   ;;  %s3237_s6 = inlined_call_operand.vmem [shape: f32[1,128], index: 6, kind: input, shape index: {}]   ;;  %s3238_s7 = inlined_call_operand.hbm [shape: f32[2,64,256], index: 7, kind: output, shape index: {}]  }
   0x1   :  { %14 = vsyncpa [#allocation3 + $0x1], 0  ;;  %s2161_s24 = smov 0   ;;  %s2163_s25 = smov 0  }
   0x2   :  { %s2165_s26 = smov 0   ;;  %s2167_s27 = smov 0  }
   0x3 LB: > { %s2182_s28 = sadd.s32 4294967295, %s2116_s27   ;;  %s1635_s29 = sadd.s32 4294967294, %s2116_s27   ;;  %s2116_s27 = sphi %s2167_s27, %s3246_s27   ;;  %s2112_s26 = sphi %s2165_s26, %s3245_s26   ;;  %s2108_s25 = sphi %s2163_s25, %s3244_s25   ;;  %s2104_s24 = sphi %s2161_s24, %s3243_s24  }
   0x4   : > { %s2186_s30 = sadd.s32 1, %s2116_s27   ;;  %s189_s8 = sadd.s32 1, %s2112_s26 }
   0x5   : > { %s186_s9 = ssub.s32 %s2116_s27, %s2186_s30  ;;  %p199_p0 = scmp.ne.s32.totalorder %s2112_s26, %s2108_s25 }
   0x6   : > { %p187_p1 = scmp.eq.s32.totalorder %s186_s9, 0  ;;  %p200_p2 = scmp.eq.s32.totalorder %s2182_s28, 1 }
   0x7   : > { %p205_p3 = scmp.ne.s32.totalorder %s2108_s25, %s2104_s24  ;;  %p206_p4 = scmp.eq.s32.totalorder %s1635_s29, 1 }
   0x8   : > { %s2197_s10 = scalar_select %p187_p1, %s2112_s26, %s189_s8  }
   0x9   : > { %p2199_p5 = por %p200_p2, %p199_p0  ;;  %p2203_p6 = por %p206_p4, %p205_p3 }
   0xa   : > { %p1638_p7 = scmp.ge.s32.totalorder %s2116_s27, 1  ;;  %p260_p8 = scmp.lt.s32.totalorder %s2116_s27, 3 }
   0xc   : > { %p261_p9 = pnand %p1638_p7, %p260_p8 }
   0xd   : > { %v518_v0 = vld [vmem:[%s3236_s5] sm:$0xff] (!%p261_p9)  ;;  %v519_v1 = vld [vmem:[%s3236_s5 + $0x8] sm:$0xff] (!%p261_p9)  ;;  %p302_p10 = scmp.lt.s32.totalorder (!%p261_p9), %s2182_s28, 1  ;;  %vm409_vm0 = vcmask (!%p261_p9), 1042432   ;;  %v520_v5 = vld [vmem:[%s3236_s5 + $0x10] sm:$0x7] (!%p261_p9) }
   0xe   : > { %264 = sbr.rel (%p261_p9) target bundleno = 1154 (0x482), region = 48  ;;  %v1861_v2 = vpack.c.bf16 (!%p261_p9), %v519_v1, %v518_v0  ;;  %v374_v3 = vld [vmem:[%s3234_s3] sm:$0xff] (!%p261_p9)  ;;  %v375_v4 = vld [vmem:[%s3234_s3 + $0x8] sm:$0xff] (!%p261_p9)  ;;  %v376_v7 = vld [vmem:[%s3234_s3 + $0x10] sm:$0x7] (!%p261_p9)  ;;  %vm384_vm1 = vcmask (!%p261_p9), 154624  }
   0xf   : > { %v1857_v6 = vpack.c.bf16 (!%p261_p9), %v375_v4, %v374_v3  ;;  %v2320_v48 = vld [vmem:[%s3237_s6] ss:$0 sm:$0xff] (!%p261_p9)  ;;  %s1714_s17 = sshll.u32 (!%p261_p9), %s2182_s28, 11  ;;  %s2118_s29 = smov (!%p261_p9), [#allocation2]  }
  0x10   : > { %1862 = vmatprep.subr.bf16.mxu1 (!%p261_p9), %v1861_v2  ;;  %v1646_v58 = vld [vmem:[%s3235_s4] ss:$0 sm:$0xff] (!%p261_p9)  ;;  %s3178_s21 = scalar_lea.hbm (!%p261_p9), %s3238_s7, %s1714_s17 }
  0x11   : > { %1864 = vmatpush3.bf16.msra.mxu1 (!%p261_p9), %v1861_v2  ;;  %1858 = vmatprep.subr.bf16.mxu0 (!%p261_p9), %v1857_v6 }
  0x12   : > { %1807 = vmatprep.subr.msk.mxu1 (!%p261_p9), %vm409_vm0, %v520_v5  ;;  %1860 = vmatpush3.bf16.msra.mxu0 (!%p261_p9), %v1857_v6 }
  0x13   : > { %1789 = vmatprep.subr.msk.mxu0 (!%p261_p9), %vm409_vm0, %v376_v7 }
  0x15   : > { %s2226_s23 = scalar_select %p302_p10, %s2182_s28, 1  ;;  %1808 = vmatpush3.msk.msra.mxu1 %vm409_vm0, %v520_v5 }
  0x16   : > { %1790 = vmatpush3.msk.msra.mxu0 %vm409_vm0, %v376_v7 }
  0x17   : > { %s1712_s9 = sshll.u32 %s2226_s23, 8  ;;  %s1711_s16 = sshll.u32 %s2226_s23, 6 }
  0x18   : > { %s2236_s15 = scalar_lea.vmem %s3232_s1, %s1712_s9  ;;  %s306_s19 = scalar_lea.vmem %s3231_s0, %s1711_s16 }
  0x19   : > { %v326_v8 = vld [vmem:[%s2236_s15] sm:$0xff]  ;;  %v327_v9 = vld [vmem:[%s2236_s15 + $0x8] sm:$0xff]  ;;  %v328_v10 = vld [vmem:[%s2236_s15 + $0x10] sm:$0xff]  ;;  %s1713_s8 = sshll.u32 %s2226_s23, 7  ;;  %s299_s23 = sand.u32 1, %s2108_s25  }
  0x1a   : > { %1809 = vmatprep.mubr.msk.f32.mxu1 %vm384_vm1, %v326_v8  ;;  %v329_v11 = vld [vmem:[%s2236_s15 + $0x18] sm:$0xff]  ;;  %v330_v12 = vld [vmem:[%s2236_s15 + $0x20] sm:$0xff]  ;;  %v331_v13 = vld [vmem:[%s2236_s15 + $0x28] sm:$0xff]  ;;  %s2409_s14 = scalar_lea.vmem %s3233_s2, %s1713_s8  ;;  %s3190_s28 = scalar_lea.sflag [#allocation3], %s299_s23 }
  0x1b   : > { %1810 = vmatmul.mubr.msk.f32.vlgmr.msra.gmra.mrb[0].mxu1 %vm384_vm1, %v327_v9  ;;  %v332_v14 = vld [vmem:[%s2236_s15 + $0x30] sm:$0xff]  ;;  %v318_v15 = vld [vmem:[%s306_s19] sm:$0xff]  ;;  %v319_v16 = vld [vmem:[%s306_s19 + $0x8] sm:$0xff]  ;;  %s2058_s8 = sshll.u32 %s2118_s29, 4  ;;  %s2059_s8 = int_to_ptr.vmem [resolvable:$false] %s2058_s8 }
  0x1c   : > { %1812 = vmatprep.mubr.msk.f32.mxu1 %vm384_vm1, %v328_v10  ;;  %1791 = vmatprep.mubr.msk.f32.mxu0 %vm384_vm1, %v318_v15  ;;  %v320_v17 = vld [vmem:[%s306_s19 + $0x10] sm:$0xff]  ;;  %v333_v18 = vld [vmem:[%s2236_s15 + $0x38] sm:$0xff]  ;;  %v334_v19 = vld [vmem:[%s2236_s15 + $0x40] sm:$0xff]  ;;  %s2060_s9 = scalar_lea.vmem %s2059_s8, 4096 }
  0x1d   : > { %1792 = vmatmul.mubr.msk.f32.vlgmr.msra.gmra.mrb[0].mxu0 %vm384_vm1, %v319_v16  ;;  %v321_v20 = vld [vmem:[%s306_s19 + $0x18] sm:$0xff]  ;;  %v322_v21 = vld [vmem:[%s306_s19 + $0x20] sm:$0xff]  ;;  %v335_v22 = vld [vmem:[%s2236_s15 + $0x48] sm:$0xff] }
  0x1e   : > { %1794 = vmatprep.mubr.msk.f32.mxu0 %vm384_vm1, %v320_v17  ;;  %v336_v23 = vld [vmem:[%s2236_s15 + $0x50] sm:$0xff]  ;;  %v323_v24 = vld [vmem:[%s306_s19 + $0x28] sm:$0xff]  ;;  %v337_v26 = vld [vmem:[%s2236_s15 + $0x58] sm:$0xff] }
  0x1f   : > { %1813 = vmatmul.mubr.msk.f32.gmra.mrb[2].mxu1 %vm384_vm1, %v329_v11  ;;  %v324_v25 = vld [vmem:[%s306_s19 + $0x30] sm:$0xff]  ;;  %v338_v27 = vld [vmem:[%s2236_s15 + $0x60] sm:$0xff]  ;;  %v325_v28 = vld [vmem:[%s306_s19 + $0x38] sm:$0xff] }
  0x20   : > { %1815 = vmatprep.mubr.msk.f32.mxu1 %vm384_vm1, %v330_v12  ;;  %v339_v29 = vld [vmem:[%s2236_s15 + $0x68] sm:$0xff]  ;;  %v340_v30 = vld [vmem:[%s2236_s15 + $0x70] sm:$0xff]  ;;  %v341_v31 = vld [vmem:[%s2236_s15 + $0x78] sm:$0xff] }
  0x21   : > { %1795 = vmatmul.mubr.msk.f32.gmra.mrb[2].mxu0 %vm384_vm1, %v321_v20  ;;  %v342_v32 = vld [vmem:[%s2236_s15 + $0x80] sm:$0xff]  ;;  %v343_v33 = vld [vmem:[%s2236_s15 + $0x88] sm:$0xff]  ;;  %v344_v34 = vld [vmem:[%s2236_s15 + $0x90] sm:$0xff] }
  0x22   : > { %1797 = vmatprep.mubr.msk.f32.mxu0 %vm384_vm1, %v322_v21  ;;  %v345_v35 = vld [vmem:[%s2236_s15 + $0x98] sm:$0xff]  ;;  %v346_v36 = vld [vmem:[%s2236_s15 + $0xa0] sm:$0xff]  ;;  %v347_v37 = vld [vmem:[%s2236_s15 + $0xa8] sm:$0xff] }
  0x23   : > { %1816 = vmatmul.mubr.msk.f32.gmra.mrb[4].mxu1 %vm384_vm1, %v331_v13  ;;  %v348_v38 = vld [vmem:[%s2236_s15 + $0xb0] sm:$0xff]  ;;  %v349_v39 = vld [vmem:[%s2236_s15 + $0xb8] sm:$0xff]  ;;  %v350_v40 = vld [vmem:[%s2236_s15 + $0xc0] sm:$0xff] }
  0x24   : > { %1818 = vmatprep.mubr.msk.f32.mxu1 %vm384_vm1, %v332_v14  ;;  %v351_v41 = vld [vmem:[%s2236_s15 + $0xc8] sm:$0xff]  ;;  %v352_v42 = vld [vmem:[%s2236_s15 + $0xd0] sm:$0xff]  ;;  %v353_v43 = vld [vmem:[%s2236_s15 + $0xd8] sm:$0xff] }
  0x25   : > { %1798 = vmatmul.mubr.msk.f32.gmra.mrb[4].mxu0 %vm384_vm1, %v323_v24  ;;  %v354_v44 = vld [vmem:[%s2236_s15 + $0xe0] sm:$0xff]  ;;  %v355_v45 = vld [vmem:[%s2236_s15 + $0xe8] sm:$0xff]  ;;  %v356_v46 = vld [vmem:[%s2236_s15 + $0xf0] sm:$0xff] }
  0x26   : > { %1800 = vmatprep.mubr.msk.f32.mxu0 %vm384_vm1, %v324_v25  ;;  %v357_v47 = vld [vmem:[%s2236_s15 + $0xf8] sm:$0xff]  ;;  %s1639_s15 = sshll.u32 %s299_s23, 7 }
  0x27   : > { %1819 = vmatmul.mubr.msk.f32.gmra.mrb[6].mxu1 %vm384_vm1, %v333_v18  ;;  %s3149_s16 = scalar_lea.vmem [#allocation2], %s1639_s15 }
  0x28   : > { %1821 = vmatprep.mubr.msk.f32.mxu1 %vm384_vm1, %v334_v19  ;;  %s1549_s18 = sshll.u32 %s3149_s16, 4  ;;  %s3180_s18 = int_to_ptr.vmem [resolvable:$true] %s1549_s18 }
  0x29   : > { %1801 = vmatmul.mubr.msk.f32.gmra.mrb[6].mxu0 %vm384_vm1, %v325_v28  ;;  %s2054_s22 = scalar_lea.vmem %s3180_s18, 2048  ;;  %p2061_p0 = scmp.lt.s32.totalorder %s3180_s18, %s2059_s8 }
  0x2a   : > { %p2055_p11 = scmp.ne.s32.totalorder %s3180_s18, %s2054_s22  ;;  %p2062_p1 = scmp.lt.s32.totalorder %s2060_s9, %s2054_s22 }
  0x2b   : > { %1822 = vmatmul.mubr.msk.f32.gmra.mrb[8].mxu1 %vm384_vm1, %v335_v22 }
  0x2c   : > { %1824 = vmatprep.mubr.msk.f32.mxu1 %vm384_vm1, %v336_v23  ;;  %p2056_p12 = pnand %p2055_p11, %p2199_p5  ;;  %p2063_p2 = por %p2062_p1, %p2061_p0 }
  0x2e   : > { %p2057_p13 = pneg %p2056_p12 }
  0x2f   : > { %1825 = vmatmul.mubr.msk.f32.gmra.mrb[10].mxu1 %vm384_vm1, %v337_v26 }
  0x30   : > { %1827 = vmatprep.mubr.msk.f32.mxu1 %vm384_vm1, %v338_v27  ;;  %p2064_p3 = pnand %p2063_p2, %p2057_p13 }
  0x33   : > { %1828 = vmatmul.mubr.msk.f32.gmra.mrb[12].mxu1 %vm384_vm1, %v339_v29 }
  0x34   : > { %1830 = vmatprep.mubr.msk.f32.mxu1 %vm384_vm1, %v340_v30 }
  0x37   : > { %1831 = vmatmul.mubr.msk.f32.gmra.mrb[14].mxu1 %vm384_vm1, %v341_v31 }
  0x38   : > { %1833 = vmatprep.mubr.msk.f32.mxu1 %vm384_vm1, %v342_v32 }
  0x3b   : > { %1834 = vmatmul.mubr.msk.f32.gmra.mrb[16].mxu1 %vm384_vm1, %v343_v33 }
  0x3c   : > { %1836 = vmatprep.mubr.msk.f32.mxu1 %vm384_vm1, %v344_v34 }
  0x3f   : > { %1837 = vmatmul.mubr.msk.f32.gmra.mrb[18].mxu1 %vm384_vm1, %v345_v35 }
  0x40   : > { %1839 = vmatprep.mubr.msk.f32.mxu1 %vm384_vm1, %v346_v36 }
  0x43   : > { %1840 = vmatmul.mubr.msk.f32.gmra.mrb[20].mxu1 %vm384_vm1, %v347_v37 }
  0x44   : > { %1842 = vmatprep.mubr.msk.f32.mxu1 %vm384_vm1, %v348_v38 }
  0x47   : > { %1843 = vmatmul.mubr.msk.f32.gmra.mrb[22].mxu1 %vm384_vm1, %v349_v39 }
  0x48   : > { %1845 = vmatprep.mubr.msk.f32.mxu1 %vm384_vm1, %v350_v40 }
  0x4b   : > { %1846 = vmatmul.mubr.msk.f32.gmra.mrb[24].mxu1 %vm384_vm1, %v351_v41 }
  0x4c   : > { %1848 = vmatprep.mubr.msk.f32.mxu1 %vm384_vm1, %v352_v42 }
  0x4f   : > { %1849 = vmatmul.mubr.msk.f32.gmra.mrb[26].mxu1 %vm384_vm1, %v353_v43 }
  0x50   : > { %1851 = vmatprep.mubr.msk.f32.mxu1 %vm384_vm1, %v354_v44 }
  0x53   : > { %1852 = vmatmul.mubr.msk.f32.gmra.mrb[28].mxu1 %vm384_vm1, %v355_v45 }
  0x54   : > { %1854 = vmatprep.mubr.msk.f32.mxu1 %vm384_vm1, %v356_v46 }
  0x57   : > { %1855 = vmatmul.mubr.msk.f32.gmra.mrb[30].mxu1 %vm384_vm1, %v357_v47 }
  0xee   : > { %v1811_v49 = vpop.f32.mrb[0].mxu1 }
  0xef   : > { %v699_v50 = vadd.f32 %v1811_v49, %v2320_v48  ;;  %v693_v51 = vpop.f32.mrb[1].mxu1 }
  0xf0   : > { %v694_v52 = vadd.f32 %v2320_v48, %v693_v51  ;;  %v1793_v63 = vpop.f32.mrb[0].mxu0 }
  0xf1   : > { %v485_v1 = vadd.f32 %v1793_v63, %v1646_v58  ;;  %v479_v2 = vpop.f32.mrb[1].mxu0 }
  0xf2   : > { %v2324_v53 = vpack.c.bf16 %v699_v50, %v694_v52  ;;  %v1814_v54 = vpop.f32.mrb[2].mxu1  ;;  %v480_v3 = vadd.f32 %v1646_v58, %v479_v2 }
  0xf3   : > { %v709_v55 = vadd.f32 %v1814_v54, %v2320_v48  ;;  %v703_v56 = vpop.f32.mrb[3].mxu1 }
  0xf4   : > { %v704_v57 = vadd.f32 %v2320_v48, %v703_v56  ;;  %v2338_v8 = vpack.c.bf16 %v485_v1, %v480_v3  ;;  %v1796_v9 = vpop.f32.mrb[2].mxu0 }
  0xf5   : > { %v495_v11 = vadd.f32 %v1796_v9, %v1646_v58  ;;  %v489_v12 = vpop.f32.mrb[3].mxu0 }
  0xf6   : > { %v2331_v59 = vpack.c.bf16 %v709_v55, %v704_v57  ;;  %v1817_v60 = vpop.f32.mrb[4].mxu1  ;;  %v490_v13 = vadd.f32 %v1646_v58, %v489_v12  ;;  %1777 = vmatprep.mubr.bf16.mxu0 %v2338_v8 }
  0xf7   : > { %v719_v61 = vadd.f32 %v1817_v60, %v2320_v48  ;;  %v713_v62 = vpop.f32.mrb[5].mxu1 }
  0xf8   : > { %v714_v0 = vadd.f32 %v2320_v48, %v713_v62  ;;  %v2345_v18 = vpack.c.bf16 %v495_v11, %v490_v13  ;;  %v1799_v19 = vpop.f32.mrb[4].mxu0 }
  0xf9   : > { %v505_v21 = vadd.f32 %v1799_v19, %v1646_v58  ;;  %v499_v22 = vpop.f32.mrb[5].mxu0 }
  0xfa   : > { %v2335_v4 = vpack.c.bf16 %v719_v61, %v714_v0  ;;  %v1820_v5 = vpop.f32.mrb[6].mxu1  ;;  %v500_v23 = vadd.f32 %v1646_v58, %v499_v22 }
  0xfb   : > { %v729_v6 = vadd.f32 %v1820_v5, %v2320_v48  ;;  %v723_v7 = vpop.f32.mrb[7].mxu1 }
  0xfc   : > { %v724_v10 = vadd.f32 %v2320_v48, %v723_v7  ;;  %v2351_v28 = vpack.c.bf16 %v505_v21, %v500_v23  ;;  %v1802_v29 = vpop.f32.mrb[6].mxu0 }
  0xfd   : > { %v515_v31 = vadd.f32 %v1802_v29, %v1646_v58  ;;  %v509_v32 = vpop.f32.mrb[7].mxu0  ;;  %v2431_v29 = vld [vmem:[%s2409_s14 + $0x48] sm:$0xff] }
  0xfe   : > { %v2342_v14 = vpack.c.bf16 %v729_v6, %v724_v10  ;;  %v1823_v15 = vpop.f32.mrb[8].mxu1  ;;  %1781 = vmatprep.mubr.bf16.mxu1 %v2351_v28  ;;  %v510_v33 = vadd.f32 %v1646_v58, %v509_v32  ;;  %vm954_vm7 = vcmp.lt.f32.partialorder %v2431_v29, 1e-09 }
  0xff   : > { %v739_v16 = vadd.f32 %v1823_v15, %v2320_v48  ;;  %v733_v17 = vpop.f32.mrb[9].mxu1 }
 0x100   : > { %v734_v20 = vadd.f32 %v2320_v48, %v733_v17  ;;  %v2358_v38 = vpack.c.bf16 %v515_v31, %v510_v33 }
 0x102   : > { %v2348_v24 = vpack.c.bf16 %v739_v16, %v734_v20  ;;  %v1826_v25 = vpop.f32.mrb[10].mxu1 }
 0x103   : > { %v749_v26 = vadd.f32 %v1826_v25, %v2320_v48  ;;  %v743_v27 = vpop.f32.mrb[11].mxu1 }
 0x104   : > { %v744_v30 = vadd.f32 %v2320_v48, %v743_v27 }
 0x106   : > { %v2355_v34 = vpack.c.bf16 %v749_v26, %v744_v30  ;;  %v1829_v35 = vpop.f32.mrb[12].mxu1 }
 0x107   : > { %v759_v36 = vadd.f32 %v1829_v35, %v2320_v48  ;;  %v753_v37 = vpop.f32.mrb[13].mxu1 }
 0x108   : > { %v754_v39 = vadd.f32 %v2320_v48, %v753_v37 }
 0x10a   : > { %v2361_v40 = vpack.c.bf16 %v759_v36, %v754_v39  ;;  %v1832_v41 = vpop.f32.mrb[14].mxu1  ;;  %v2439_v36 = vld [vmem:[%s2409_s14 + $0x20] sm:$0xff] }
 0x10b   : > { %v769_v42 = vadd.f32 %v1832_v41, %v2320_v48  ;;  %v763_v43 = vpop.f32.mrb[15].mxu1  ;;  %vm949_vm8 = vcmp.lt.f32.partialorder %v2439_v36, 1e-09 }
 0x10c   : > { %v764_v44 = vadd.f32 %v2320_v48, %v763_v43  ;;  %v2456_v43 = vld [vmem:[%s2409_s14 + $0x28] sm:$0xff] }
 0x10d   : > { %vm950_vm10 = vcmp.lt.f32.partialorder %v2456_v43, 1e-09 }
 0x10e   : > { %v2365_v45 = vpack.c.bf16 %v769_v42, %v764_v44  ;;  %v1835_v46 = vpop.f32.mrb[16].mxu1  ;;  %v2459_v44 = vld [vmem:[%s2409_s14 + $0x68] sm:$0xff] }
 0x10f   : > { %v779_v47 = vadd.f32 %v1835_v46, %v2320_v48  ;;  %v773_v49 = vpop.f32.mrb[17].mxu1  ;;  %v2466_v46 = vld [vmem:[%s2409_s14 + $0x38] sm:$0xff]  ;;  %vm958_vm11 = vcmp.lt.f32.partialorder %v2459_v44, 1e-09 }
 0x110   : > { %v774_v50 = vadd.f32 %v2320_v48, %v773_v49  ;;  %vm952_vm13 = vcmp.lt.f32.partialorder %v2466_v46, 1e-09 }
 0x112   : > { %v864_v51 = vpack.c.bf16 %v779_v47, %v774_v50  ;;  %v1838_v52 = vpop.f32.mrb[18].mxu1 }
 0x113   : > { %v789_v54 = vadd.f32 %v1838_v52, %v2320_v48  ;;  %v783_v55 = vpop.f32.mrb[19].mxu1 }
 0x114   : > { %1761 = vmatprep.subr.bf16.mxu0 %v864_v51  ;;  %1865 = vmatprep.subr.bf16.mxu1 %v864_v51  ;;  %v784_v56 = vadd.f32 %v2320_v48, %v783_v55  ;;  %v2480_v51 = vld [vmem:[%s2409_s14 + $0x50] sm:$0xff] }
 0x115   : > { %1762 = vmatpush3.bf16.xpose.msra.mxu0 %v2324_v53  ;;  %1873 = vmatpush3.bf16.xpose.msra.mxu1 %v2324_v53  ;;  %vm955_vm14 = vcmp.lt.f32.partialorder %v2480_v51, 1e-09 }
 0x116   : > { %v865_v57 = vpack.c.bf16 %v789_v54, %v784_v56  ;;  %v1841_v58 = vpop.f32.mrb[20].mxu1  ;;  %v2483_v54 = vld [vmem:[%s2409_s14 + $0x58] sm:$0xff] }
 0x117   : > { %v799_v60 = vadd.f32 %v1841_v58, %v2320_v48  ;;  %v793_v61 = vpop.f32.mrb[21].mxu1  ;;  %vm956_vm15 = vcmp.lt.f32.partialorder %v2483_v54, 1e-09 }
 0x118   : > { %1763 = vmatprep.subr.bf16.mxu0 %v865_v57  ;;  %1866 = vmatprep.subr.bf16.mxu1 %v865_v57  ;;  %v794_v62 = vadd.f32 %v2320_v48, %v793_v61 }
 0x11a   : > { %v866_v63 = vpack.c.bf16 %v799_v60, %v794_v62  ;;  %v1844_v0 = vpop.f32.mrb[22].mxu1 }
 0x11b   : > { %v809_v1 = vadd.f32 %v1844_v0, %v2320_v48  ;;  %v803_v2 = vpop.f32.mrb[23].mxu1 }
 0x11c   : > { %v804_v3 = vadd.f32 %v2320_v48, %v803_v2 }
 0x11d   : > { %1764 = vmatpush3.bf16.xpose.msra.mxu0 %v2331_v59  ;;  %1874 = vmatpush3.bf16.xpose.msra.mxu1 %v2331_v59 }
 0x11e   : > { %1765 = vmatprep.subr.bf16.mxu0 %v866_v63  ;;  %1867 = vmatprep.subr.bf16.mxu1 %v866_v63  ;;  %v867_v53 = vpack.c.bf16 %v809_v1, %v804_v3  ;;  %v1847_v5 = vpop.f32.mrb[24].mxu1 }
 0x11f   : > { %v819_v6 = vadd.f32 %v1847_v5, %v2320_v48  ;;  %v813_v7 = vpop.f32.mrb[25].mxu1 }
 0x120   : > { %v814_v9 = vadd.f32 %v2320_v48, %v813_v7 }
 0x122   : > { %v868_v10 = vpack.c.bf16 %v819_v6, %v814_v9  ;;  %v1850_v11 = vpop.f32.mrb[26].mxu1  ;;  %v2499_v9 = vld [vmem:[%s2409_s14 + $0x70] sm:$0xff] }
 0x123   : > { %v829_v12 = vadd.f32 %v1850_v11, %v2320_v48  ;;  %v823_v13 = vpop.f32.mrb[27].mxu1  ;;  %vm959_vm0 = vcmp.lt.f32.partialorder %v2499_v9, 1e-09 }
 0x124   : > { %v824_v15 = vadd.f32 %v2320_v48, %v823_v13 }
 0x125   : > { %1766 = vmatpush3.bf16.xpose.msra.mxu0 %v2335_v4  ;;  %1875 = vmatpush3.bf16.xpose.msra.mxu1 %v2335_v4 }
 0x126   : > { %1767 = vmatprep.subr.bf16.mxu0 %v867_v53  ;;  %1868 = vmatprep.subr.bf16.mxu1 %v867_v53  ;;  %v869_v59 = vpack.c.bf16 %v829_v12, %v824_v15  ;;  %v1853_v16 = vpop.f32.mrb[28].mxu1 }
 0x127   : > { %v839_v17 = vadd.f32 %v1853_v16, %v2320_v48  ;;  %v833_v19 = vpop.f32.mrb[29].mxu1 }
 0x128   : > { %v834_v20 = vadd.f32 %v2320_v48, %v833_v19 }
 0x12a   : > { %v870_v21 = vpack.c.bf16 %v839_v17, %v834_v20  ;;  %v1856_v22 = vpop.f32.mrb[30].mxu1 }
 0x12b   : > { %v849_v23 = vadd.f32 %v1856_v22, %v2320_v48  ;;  %v843_v25 = vpop.f32.mrb[31].mxu1 }
 0x12c   : > { %v844_v26 = vadd.f32 %v2320_v48, %v843_v25  ;;  %v2412_v48 = vld [vmem:[%s2409_s14] sm:$0xff] }
 0x12d   : > { %1768 = vmatpush3.bf16.xpose.msra.mxu0 %v2342_v14  ;;  %1876 = vmatpush3.bf16.xpose.msra.mxu1 %v2342_v14  ;;  %v2418_v14 = vld [vmem:[%s2409_s14 + $0x10] sm:$0xff]  ;;  %vm945_vm2 = vcmp.lt.f32.partialorder %v2412_v48, 1e-09 }
 0x12e   : > { %1769 = vmatprep.subr.bf16.mxu0 %v868_v10  ;;  %1869 = vmatprep.subr.bf16.mxu1 %v868_v10  ;;  %v871_v4 = vpack.c.bf16 %v849_v23, %v844_v26  ;;  %vm947_vm4 = vcmp.lt.f32.partialorder %v2418_v14, 1e-09  ;;  %v2502_v10 = vld [vmem:[%s2409_s14 + $0x78] sm:$0xff] }
 0x12f   : > { %vm960_vm1 = vcmp.lt.f32.partialorder %v2502_v10, 1e-09 }
 0x135   : > { %1770 = vmatpush3.bf16.xpose.msra.mxu0 %v2348_v24  ;;  %1877 = vmatpush3.bf16.xpose.msra.mxu1 %v2348_v24  ;;  %v2425_v24 = vld [vmem:[%s2409_s14 + $0x40] sm:$0xff] }
 0x136   : > { %1771 = vmatprep.subr.bf16.mxu0 %v869_v59  ;;  %1870 = vmatprep.subr.bf16.mxu1 %v869_v59  ;;  %vm953_vm6 = vcmp.lt.f32.partialorder %v2425_v24, 1e-09 }
 0x13d   : > { %1772 = vmatpush3.bf16.xpose.msra.mxu0 %v2355_v34  ;;  %1878 = vmatpush3.bf16.xpose.msra.mxu1 %v2355_v34 }
 0x13e   : > { %1773 = vmatprep.subr.bf16.mxu0 %v870_v21  ;;  %1871 = vmatprep.subr.bf16.mxu1 %v870_v21 }
 0x145   : > { %1774 = vmatpush3.bf16.xpose.msra.mxu0 %v2361_v40  ;;  %1879 = vmatpush3.bf16.xpose.msra.mxu1 %v2361_v40  ;;  %v2445_v40 = vld [vmem:[%s2409_s14 + $0x60] sm:$0xff] }
 0x146   : > { %1775 = vmatprep.subr.bf16.mxu0 %v871_v4  ;;  %1872 = vmatprep.subr.bf16.mxu1 %v871_v4  ;;  %vm957_vm9 = vcmp.lt.f32.partialorder %v2445_v40, 1e-09 }
 0x14d   : > { %1776 = vmatpush3.bf16.xpose.msra.mxu0 %v2365_v45  ;;  %1880 = vmatpush3.bf16.xpose.msra.mxu1 %v2365_v45  ;;  %v2463_v45 = vld [vmem:[%s2409_s14 + $0x30] sm:$0xff] }
 0x14e   : > { %vm951_vm12 = vcmp.lt.f32.partialorder %v2463_v45, 1e-09 }
 0x154   : > { %1778 = vmatmul.mubr.bf16.vlgmr.msra.gmra.mrb[8].mxu0 %v2338_v8  ;;  %1782 = vmatmul.mubr.bf16.vlgmr.msra.gmra.mrb[32].mxu1 %v2351_v28  ;;  %v2415_v8 = vld [vmem:[%s2409_s14 + $0x8] sm:$0xff] }
 0x155   : > { %1779 = vmatprep.mubr.bf16.mxu0 %v2345_v18  ;;  %1783 = vmatprep.mubr.bf16.mxu1 %v2358_v38  ;;  %vm946_vm3 = vcmp.lt.f32.partialorder %v2415_v8, 1e-09 }
 0x15c   : > { %1780 = vmatmul.mubr.bf16.gmra.mrb[12].mxu0 %v2345_v18  ;;  %1784 = vmatmul.mubr.bf16.gmra.mrb[36].mxu1 %v2358_v38  ;;  %v2421_v18 = vld [vmem:[%s2409_s14 + $0x18] sm:$0xff] }
 0x15d   : > { %vm948_vm5 = vcmp.lt.f32.partialorder %v2421_v18, 1e-09 }
 0x227   : > { %v906_v27 = vpop.f32.mrb[8].mxu0  ;;  %v926_v28 = vpop.f32.mrb[32].mxu1 }
 0x228   : > { %v2433_v30 = vsel %vm945_vm2, -1e+09, %v906_v27  ;;  %v908_v31 = vpop.f32.mrb[9].mxu0  ;;  %v928_v32 = vpop.f32.mrb[33].mxu1  ;;  %v2470_v47 = vsel %vm953_vm6, -1e+09, %v926_v28 }
 0x229   : > { %v2436_v33 = vsel %vm946_vm3, -1e+09, %v908_v31  ;;  %v910_v34 = vpop.f32.mrb[10].mxu0  ;;  %v930_v35 = vpop.f32.mrb[34].mxu1  ;;  %v2472_v49 = vsel %vm954_vm7, -1e+09, %v928_v32 }
 0x22a   : > { %v912_v37 = vpop.f32.mrb[11].mxu0  ;;  %v977_v38 = vmax.f32 %v2433_v30, %v2436_v33  ;;  %v932_v39 = vpop.f32.mrb[35].mxu1  ;;  %v2449_v41 = vsel %vm947_vm4, -1e+09, %v910_v34  ;;  %v989_v61 = vmax.f32 %v2470_v47, %v2472_v49  ;;  %v971_v12 = vsel %vm955_vm14, -1e+09, %v930_v35 }
 0x22b   : > { %v2453_v42 = vsel %vm948_vm5, -1e+09, %v912_v37  ;;  %v972_v13 = vsel %vm956_vm15, -1e+09, %v932_v39 }
 0x22c   : > { %978 = vmax.xlane.f32.xlu0 %v977_v38  ;;  %v980_v50 = vmax.f32 %v2449_v41, %v2453_v42  ;;  %v992_v15 = vmax.f32 %v971_v12, %v972_v13 }
 0x22f   : > { %v916_v52 = vpop.f32.mrb[12].mxu0  ;;  %v936_v55 = vpop.f32.mrb[36].mxu1 }
 0x230   : > { %v965_v56 = vsel %vm949_vm8, -1e+09, %v916_v52  ;;  %981 = vmax.xlane.f32.xlu0 %v980_v50  ;;  %v918_v57 = vpop.f32.mrb[13].mxu0  ;;  %v2487_v58 = vsel %vm957_vm9, -1e+09, %v936_v55  ;;  %v938_v60 = vpop.f32.mrb[37].mxu1 }
 0x231   : > { %v966_v62 = vsel %vm950_vm10, -1e+09, %v918_v57  ;;  %v920_v63 = vpop.f32.mrb[14].mxu0  ;;  %v974_v0 = vsel %vm958_vm11, -1e+09, %v938_v60  ;;  %v940_v1 = vpop.f32.mrb[38].mxu1 }
 0x232   : > { %v922_v2 = vpop.f32.mrb[15].mxu0  ;;  %v983_v3 = vmax.f32 %v965_v56, %v966_v62  ;;  %v942_v53 = vpop.f32.mrb[39].mxu1  ;;  %v967_v5 = vsel %vm951_vm12, -1e+09, %v920_v63  ;;  %v995_v7 = vmax.f32 %v2487_v58, %v974_v0  ;;  %v2506_v59 = vsel %vm959_vm0, -1e+09, %v940_v1 }
 0x233   : > { %v968_v6 = vsel %vm952_vm13, -1e+09, %v922_v2  ;;  %v2508_v16 = vsel %vm960_vm1, -1e+09, %v942_v53 }
 0x234   : > { %990 = vmax.xlane.f32.xlu0 %v989_v61  ;;  %984 = vmax.xlane.f32.xlu1 %v983_v3  ;;  %v986_v11 = vmax.f32 %v967_v5, %v968_v6  ;;  %v998_v17 = vmax.f32 %v2506_v59, %v2508_v16 }
 0x238   : > { %996 = vmax.xlane.f32.xlu0 %v995_v7  ;;  %987 = vmax.xlane.f32.xlu1 %v986_v11 }
 0x23c   : > { %993 = vmax.xlane.f32.xlu1 %v992_v15 }
 0x240   : > { %999 = vmax.xlane.f32.xlu1 %v998_v17 }
 0x2b9   : > { %v979_v19 = vpop.xlane.xlu0 %978 }
 0x2ba   : > { %v1001_v20 = vsub.f32 %v2433_v30, %v979_v19  ;;  %v1002_v21 = vsub.f32 %v2436_v33, %v979_v19 }
 0x2bc   : > { %v1017_v22 = vmul.f32 1.442695, %v1001_v20  ;;  %v1019_v23 = vmul.f32 1.442695, %v1002_v21 }
 0x2bd   : > { %v982_v25 = vpop.xlane.xlu0 %981 }
 0x2be   : > { %1922 = vpow2.f32 %v1017_v22  ;;  %v1003_v26 = vsub.f32 %v2449_v41, %v982_v25  ;;  %v1004_v4 = vsub.f32 %v2453_v42, %v982_v25 }
 0x2bf   : > { %1924 = vpow2.f32 %v1019_v23 }
 0x2c0   : > { %v1021_v27 = vmul.f32 1.442695, %v1003_v26  ;;  %v1023_v28 = vmul.f32 1.442695, %v1004_v4 }
 0x2c1   : > { %v991_v31 = vpop.xlane.xlu0 %990  ;;  %v985_v32 = vpop.xlane.xlu1 %984 }
 0x2c2   : > { %1926 = vpow2.f32 %v1021_v27  ;;  %v1009_v34 = vsub.f32 %v2470_v47, %v991_v31  ;;  %v1010_v30 = vsub.f32 %v2472_v49, %v991_v31  ;;  %v1005_v35 = vsub.f32 %v965_v56, %v985_v32 }
 0x2c3   : > { %1928 = vpow2.f32 %v1023_v28  ;;  %v1006_v33 = vsub.f32 %v966_v62, %v985_v32 }
 0x2c4   : > { %v1033_v37 = vmul.f32 1.442695, %v1009_v34  ;;  %v1035_v38 = vmul.f32 1.442695, %v1010_v30  ;;  %v1025_v39 = vmul.f32 1.442695, %v1005_v35 }
 0x2c5   : > { %v1027_v50 = vmul.f32 1.442695, %v1006_v33  ;;  %v997_v41 = vpop.xlane.xlu0 %996  ;;  %v988_v52 = vpop.xlane.xlu1 %987 }
 0x2c6   : > { %1930 = vpow2.f32 %v1033_v37  ;;  %v1013_v42 = vsub.f32 %v2487_v58, %v997_v41  ;;  %v1014_v55 = vsub.f32 %v974_v0, %v997_v41  ;;  %v1007_v57 = vsub.f32 %v967_v5, %v988_v52 }
 0x2c7   : > { %1932 = vpow2.f32 %v1035_v38  ;;  %v1008_v60 = vsub.f32 %v968_v6, %v988_v52  ;;  %v2570_v37 = vadd.f32 1e-09, %v2412_v48  ;;  %v2573_v38 = vadd.f32 1e-09, %v2415_v8 }
 0x2c8   : > { %v2519_v61 = vpop.eup %1922  ;;  %1934 = vpow2.f32 %v1025_v39  ;;  %v1041_v47 = vmul.f32 1.442695, %v1013_v42  ;;  %v1043_v49 = vmul.f32 1.442695, %v1014_v55  ;;  %v1029_v56 = vmul.f32 1.442695, %v1007_v57 }
 0x2c9   : > { %v2521_v62 = vpop.eup %1924  ;;  %1936 = vpow2.f32 %v1027_v50  ;;  %v1031_v63 = vmul.f32 1.442695, %v1008_v60  ;;  %v994_v1 = vpop.xlane.xlu1 %993  ;;  %v2576_v39 = vadd.f32 1e-09, %v2418_v14  ;;  %v2579_v50 = vadd.f32 1e-09, %v2425_v24 }
 0x2ca   : > { %1938 = vpow2.f32 %v1041_v47  ;;  %v1011_v2 = vsub.f32 %v971_v12, %v994_v1  ;;  %v1012_v3 = vsub.f32 %v972_v13, %v994_v1  ;;  %v1049_v58 = vadd.f32 %v2521_v62, %v2519_v61 }
 0x2cb   : > { %1940 = vpow2.f32 %v1043_v49  ;;  %v2583_v41 = vadd.f32 1e-09, %v2431_v29  ;;  %v2587_v52 = vadd.f32 1e-09, %v2480_v51  ;;  %v2591_v48 = vadd.f32 1e-09, %v2439_v36 }
 0x2cc   : > { %v2525_v0 = vpop.eup %1926  ;;  %1942 = vpow2.f32 %v1029_v56  ;;  %v1037_v53 = vmul.f32 1.442695, %v1011_v2  ;;  %v1039_v5 = vmul.f32 1.442695, %v1012_v3  ;;  %1050 = vadd.xlane.f32.xlu0 %v1049_v58  ;;  %v2595_v8 = vadd.f32 1e-09, %v2483_v54 }
 0x2cd   : > { %v2527_v6 = vpop.eup %1928  ;;  %1944 = vpow2.f32 %v1031_v63  ;;  %v1000_v7 = vpop.xlane.xlu1 %999  ;;  %v2599_v14 = vadd.f32 1e-09, %v2463_v45  ;;  %v2603_v24 = vadd.f32 1e-09, %v2466_v46  ;;  %v2607_v29 = vadd.f32 1e-09, %v2445_v40 }
 0x2ce   : > { %1946 = vpow2.f32 %v1037_v53  ;;  %v1015_v11 = vsub.f32 %v2506_v59, %v1000_v7  ;;  %v1016_v12 = vsub.f32 %v2508_v16, %v1000_v7  ;;  %v1052_v13 = vadd.f32 %v2527_v6, %v2525_v0 }
 0x2cf   : > { %1948 = vpow2.f32 %v1039_v5  ;;  %v2611_v36 = vadd.f32 1e-09, %v2459_v44  ;;  %v2615_v45 = vadd.f32 1e-09, %v2499_v9  ;;  %v2619_v46 = vadd.f32 1e-09, %v2502_v10 }
 0x2d0   : > { %v2533_v15 = vpop.eup %1930  ;;  %v1045_v17 = vmul.f32 1.442695, %v1015_v11  ;;  %v1047_v19 = vmul.f32 1.442695, %v1016_v12  ;;  %1053 = vadd.xlane.f32.xlu1 %v1052_v13  ;;  %v2622_v54 = vadd.f32 1e-09, %v2456_v43 }
 0x2d1   : > { %v2535_v20 = vpop.eup %1932  ;;  %v2626_v44 = vadd.f32 1e-09, %v2421_v18  ;;  %vm1171_vm2 = vcmp.eq.f32.partialorder %v2579_v50, inf  ;;  %vm1178_vm3 = vcmp.eq.f32.partialorder %v2583_v41, inf  ;;  %vm1185_vm4 = vcmp.eq.f32.partialorder %v2587_v52, inf }
 0x2d2   : > { %v2537_v21 = vpop.eup %1934  ;;  %1950 = vpow2.f32 %v1045_v17  ;;  %v1061_v27 = vadd.f32 %v2535_v20, %v2533_v15  ;;  %vm1187_vm5 = vcmp.eq.f32.partialorder %v2587_v52, 0.0  ;;  %v1188_v2 = vand.u32 2147483648, %v2587_v52 }
 0x2d3   : > { %v2539_v22 = vpop.eup %1936  ;;  %1952 = vpow2.f32 %v1047_v19  ;;  %v1146_v3 = vand.u32 2147483648, %v2591_v48  ;;  %vm1192_vm6 = vcmp.eq.f32.partialorder %v2595_v8, inf  ;;  %vm1194_vm7 = vcmp.eq.f32.partialorder %v2595_v8, 0.0 }
 0x2d4   : > { %v2541_v59 = vpop.eup %1938  ;;  %v1055_v16 = vadd.f32 %v2539_v22, %v2537_v21  ;;  %1954 = vrsqrt.f32 %v2570_v37  ;;  %v1195_v5 = vand.u32 2147483648, %v2595_v8  ;;  %v1153_v13 = vand.u32 2147483648, %v2622_v54 }
 0x2d5   : > { %v2545_v23 = vpop.eup %1940  ;;  %1956 = vrsqrt.f32 %v2573_v38  ;;  %vm1157_vm8 = vcmp.eq.f32.partialorder %v2599_v14, inf  ;;  %vm1164_vm9 = vcmp.eq.f32.partialorder %v2603_v24, inf  ;;  %vm1199_vm10 = vcmp.eq.f32.partialorder %v2607_v29, inf }
 0x2d6   : > { %v2547_v25 = vpop.eup %1942  ;;  %1056 = vadd.xlane.f32.xlu0 %v1055_v16  ;;  %v1067_v30 = vadd.f32 %v2545_v23, %v2541_v59  ;;  %1958 = vrsqrt.f32 %v2576_v39  ;;  %vm1201_vm11 = vcmp.eq.f32.partialorder %v2607_v29, 0.0  ;;  %vm1206_vm12 = vcmp.eq.f32.partialorder %v2611_v36, inf }
 0x2d7   : > { %v2549_v26 = vpop.eup %1944  ;;  %1960 = vrsqrt.f32 %v2579_v50  ;;  %vm1208_vm13 = vcmp.eq.f32.partialorder %v2611_v36, 0.0  ;;  %vm1213_vm14 = vcmp.eq.f32.partialorder %v2615_v45, inf  ;;  %vm1215_vm15 = vcmp.eq.f32.partialorder %v2615_v45, 0.0 }
 0x2d8   : > { %v2551_v4 = vpop.eup %1946  ;;  %v1058_v28 = vadd.f32 %v2549_v26, %v2547_v25  ;;  %1962 = vrsqrt.f32 %v2583_v41  ;;  %vm1220_vm0 = vcmp.eq.f32.partialorder %v2619_v46, inf  ;;  %vm1222_vm1 = vcmp.eq.f32.partialorder %v2619_v46, 0.0 }
 0x2d9   : > { %v2557_v31 = vpop.eup %1948  ;;  %1964 = vrsqrt.f32 %v2587_v52 }
 0x2da   : > { %1062 = vadd.xlane.f32.xlu0 %v1061_v27  ;;  %1059 = vadd.xlane.f32.xlu1 %v1058_v28  ;;  %v1064_v32 = vadd.f32 %v2557_v31, %v2551_v4  ;;  %1966 = vrsqrt.f32 %v2591_v48  ;;  %v1160_v27 = vand.u32 2147483648, %v2599_v14 }
 0x2db   : > { %1968 = vrsqrt.f32 %v2595_v8 }
 0x2dc   : > { %v2561_v34 = vpop.eup %1950  ;;  %1970 = vrsqrt.f32 %v2599_v14 }
 0x2dd   : > { %v2565_v35 = vpop.eup %1952  ;;  %1972 = vrsqrt.f32 %v2603_v24 }
 0x2de   : > { %1068 = vadd.xlane.f32.xlu0 %v1067_v30  ;;  %1065 = vadd.xlane.f32.xlu1 %v1064_v32  ;;  %v1070_v33 = vadd.f32 %v2565_v35, %v2561_v34  ;;  %v1955_v51 = vpop.eup %1954  ;;  %1974 = vrsqrt.f32 %v2607_v29 }
 0x2df   : > { %v1957_v40 = vpop.eup %1956  ;;  %1976 = vrsqrt.f32 %v2611_v36  ;;  %v2647_v53 = vmul.f32 %v1955_v51, %v2570_v37 }
 0x2e0   : > { %v2629_v42 = vpop.eup %1958  ;;  %1978 = vrsqrt.f32 %v2615_v45  ;;  %v2653_v12 = vmul.f32 %v1957_v40, %v2573_v38  ;;  %v1202_v40 = vand.u32 2147483648, %v2607_v29 }
 0x2e1   : > { %v1961_v9 = vpop.eup %1960  ;;  %1980 = vrsqrt.f32 %v2619_v46 }
 0x2e2   : > { %1071 = vadd.xlane.f32.xlu1 %v1070_v33  ;;  %v1963_v10 = vpop.eup %1962  ;;  %1982 = vrsqrt.f32 %v2622_v54  ;;  %v1170_v47 = vmul.f32 %v1961_v9, %v2579_v50  ;;  %v1167_v33 = vand.u32 2147483648, %v2603_v24 }
 0x2e3   : > { %v1965_v43 = vpop.eup %1964  ;;  %1984 = vrsqrt.f32 %v2626_v44  ;;  %v1177_v63 = vmul.f32 %v1963_v10, %v2583_v41 }
 0x2e4   : > { %v1967_v57 = vpop.eup %1966  ;;  %v1184_v1 = vmul.f32 %v1965_v43, %v2587_v52  ;;  %v2660_v19 = vsel %vm1171_vm2, %v2579_v50, %v1170_v47  ;;  %vm1143_vm2 = vcmp.eq.f32.partialorder %v2591_v48, inf }
 0x2e5   : > { %v1969_v60 = vpop.eup %1968  ;;  %v2668_v32 = vsel %vm1178_vm3, %v2583_v41, %v1177_v63  ;;  %v2680_v10 = vmul.f32 %v1967_v57, %v2591_v48  ;;  %vm1150_vm3 = vcmp.eq.f32.partialorder %v2622_v54, inf }
 0x2e6   : > { %v1971_v56 = vpop.eup %1970  ;;  %v1191_v16 = vmul.f32 %v1969_v60, %v2595_v8  ;;  %v1186_v30 = vsel %vm1185_vm4, %v2587_v52, %v1184_v1  ;;  %v1209_v60 = vand.u32 2147483648, %v2611_v36  ;;  %vm1115_vm4 = vcmp.eq.f32.partialorder %v2570_v37, inf }
 0x2e7   : > { %v1973_v58 = vpop.eup %1972  ;;  %v2687_v63 = vsel %vm1187_vm5, %v1188_v2, %v1186_v30  ;;  %v1216_v2 = vand.u32 2147483648, %v2615_v45  ;;  %vm1122_vm5 = vcmp.eq.f32.partialorder %v2573_v38, inf }
 0x2e8   : > { %v1975_v11 = vpop.eup %1974  ;;  %v1193_v1 = vsel %vm1192_vm6, %v2595_v8, %v1191_v16  ;;  %vm1159_vm6 = vcmp.eq.f32.partialorder %v2599_v14, 0.0 }
 0x2e9   : > { %v1977_v17 = vpop.eup %1976  ;;  %v1198_v43 = vmul.f32 %v1975_v11, %v2607_v29  ;;  %v1156_v11 = vmul.f32 %v1971_v56, %v2599_v14  ;;  %v2705_v16 = vsel %vm1194_vm7, %v1195_v5, %v1193_v1  ;;  %vm1166_vm7 = vcmp.eq.f32.partialorder %v2603_v24, 0.0 }
 0x2ea   : > { %v1979_v28 = vpop.eup %1978 }
 0x2eb   : > { %v1981_v51 = vpop.eup %1980  ;;  %v1200_v56 = vsel %vm1199_vm10, %v2607_v29, %v1198_v43  ;;  %v2722_v43 = vsel %vm1157_vm8, %v2599_v14, %v1156_v11  ;;  %vm1117_vm8 = vcmp.eq.f32.partialorder %v2570_v37, 0.0  ;;  %vm1129_vm10 = vcmp.eq.f32.partialorder %v2576_v39, inf }
 0x2ec   : > { %v1983_v9 = vpop.eup %1982  ;;  %v1219_v18 = vmul.f32 %v1981_v51, %v2619_v46  ;;  %v1223_v51 = vand.u32 2147483648, %v2619_v46 }
 0x2ed   : > { %v1985_v47 = vpop.eup %1984  ;;  %v2698_v52 = vmul.f32 %v1983_v9, %v2622_v54 }
 0x359   : > { %v1051_v55 = vpop.xlane.xlu0 %1050 }
 0x35a   : > { %1986 = vrcp.f32 %v1051_v55  ;;  %v1205_v55 = vmul.f32 %v1977_v17, %v2611_v36  ;;  %v1163_v17 = vmul.f32 %v1973_v58, %v2603_v24 }
 0x35c   : > { %v1207_v58 = vsel %vm1206_vm12, %v2611_v36, %v1205_v55  ;;  %v1221_v55 = vsel %vm1220_vm0, %v2619_v46, %v1219_v18  ;;  %vm1136_vm12 = vcmp.eq.f32.partialorder %v2626_v44, inf  ;;  %vm1145_vm0 = vcmp.eq.f32.partialorder %v2591_v48, 0.0 }
 0x35d   : > { %v1054_v7 = vpop.xlane.xlu1 %1053  ;;  %v2751_v29 = vsel %vm1222_vm1, %v1223_v51, %v1221_v55  ;;  %v1139_v51 = vand.u32 2147483648, %v2626_v44  ;;  %vm1152_vm1 = vcmp.eq.f32.partialorder %v2622_v54, 0.0 }
 0x35e   : > { %1988 = vrcp.f32 %v1054_v7  ;;  %v1212_v7 = vmul.f32 %v1979_v28, %v2615_v45 }
 0x360   : > { %v1214_v30 = vsel %vm1213_vm14, %v2615_v45, %v1212_v7  ;;  %v1125_v45 = vand.u32 2147483648, %v2573_v38  ;;  %vm1131_vm14 = vcmp.eq.f32.partialorder %v2576_v39, 0.0 }
 0x363   : > { %v1057_v57 = vpop.xlane.xlu0 %1056 }
 0x364   : > { %v1987_v49 = vpop.eup %1986  ;;  %1990 = vrcp.f32 %v1057_v57  ;;  %v2743_v57 = vsel %vm1215_vm15, %v1216_v2, %v1214_v30  ;;  %v1128_v2 = vmul.f32 %v2629_v42, %v2576_v39  ;;  %v1132_v30 = vand.u32 2147483648, %v2576_v39 }
 0x365   : > { %v1081_v28 = vmul.f32 %v1987_v49, %v2519_v61  ;;  %v1082_v8 = vmul.f32 %v1987_v49, %v2521_v62  ;;  %v2727_v61 = vsel %vm1164_vm9, %v2603_v24, %v1163_v17  ;;  %v2733_v62 = vsel %vm1201_vm11, %v1202_v40, %v1200_v56 }
 0x366   : > { %v2737_v49 = vsel %vm1208_vm13, %v1209_v60, %v1207_v58  ;;  %v1118_v60 = vand.u32 2147483648, %v2570_v37  ;;  %v1123_v17 = vsel %vm1122_vm5, %v2573_v38, %v2653_v12  ;;  %vm1173_vm9 = vcmp.eq.f32.partialorder %v2579_v50, 0.0 }
 0x367   : > { %v1063_v5 = vpop.xlane.xlu0 %1062  ;;  %v1060_v9 = vpop.xlane.xlu1 %1059  ;;  %v2745_v18 = vadd.f32 1e-09, %v1081_v28  ;;  %v2753_v36 = vadd.f32 1e-09, %v1082_v8  ;;  %vm1180_vm11 = vcmp.eq.f32.partialorder %v2583_v41, 0.0  ;;  %vm1124_vm13 = vcmp.eq.f32.partialorder %v2573_v38, 0.0 }
 0x368   : > { %v1989_v1 = vpop.eup %1988  ;;  %1992 = vrcp.f32 %v1063_v5  ;;  %v1130_v5 = vsel %vm1129_vm10, %v2576_v39, %v1128_v2  ;;  %vm1138_vm15 = vcmp.eq.f32.partialorder %v2626_v44, 0.0  ;;  %v3241_v24 = vand.u32 2147483648, %v2579_v50 }
 0x369   : > { %v1083_v7 = vmul.f32 %v1989_v1, %v2525_v0  ;;  %v1084_v11 = vmul.f32 %v1989_v1, %v2527_v6  ;;  %1994 = vrcp.f32 %v1060_v9  ;;  %v1116_v6 = vsel %vm1115_vm4, %v2570_v37, %v2647_v53 }
 0x36a   : > { %v1135_v53 = vmul.f32 %v1985_v47, %v2626_v44  ;;  %v1144_v1 = vsel %vm1143_vm2, %v2591_v48, %v2680_v10  ;;  %v2814_v10 = vsel %vm1124_vm13, %v1125_v45, %v1123_v17  ;;  %vm1243_vm2 = vcmp.eq.f32.partialorder %v2745_v18, inf }
 0x36b   : > { %v1069_v0 = vpop.xlane.xlu0 %1068  ;;  %v1066_v40 = vpop.xlane.xlu1 %1065  ;;  %v2762_v46 = vadd.f32 1e-09, %v1083_v7  ;;  %v2770_v58 = vadd.f32 1e-09, %v1084_v11  ;;  %v2802_v7 = vsel %vm1117_vm8, %v1118_v60, %v1116_v6  ;;  %v1151_v11 = vsel %vm1150_vm3, %v2622_v54, %v2698_v52 }
 0x36c   : > { %1996 = vrcp.f32 %v1069_v0  ;;  %v2828_v6 = vsel %vm1145_vm0, %v1146_v3, %v1144_v1  ;;  %v2833_v39 = vsel %vm1152_vm1, %v1153_v13, %v1151_v11  ;;  %vm1250_vm3 = vcmp.eq.f32.partialorder %v2753_v36, inf }
 0x36d   : > { %1998 = vrcp.f32 %v1066_v40  ;;  %vm1245_vm4 = vcmp.eq.f32.partialorder %v2745_v18, 0.0  ;;  %vm1252_vm5 = vcmp.eq.f32.partialorder %v2753_v36, 0.0  ;;  %vm1264_vm8 = vcmp.eq.f32.partialorder %v2770_v58, inf }
 0x36e   : > { %v1991_v56 = vpop.eup %1990  ;;  %2000 = vrsqrt.f32 %v2745_v18 }
 0x36f   : > { %2002 = vrsqrt.f32 %v2753_v36  ;;  %v1085_v12 = vmul.f32 %v1991_v56, %v2537_v21  ;;  %v1086_v28 = vmul.f32 %v1991_v56, %v2539_v22  ;;  %v1072_v42 = vpop.xlane.xlu1 %1071  ;;  %v1137_v22 = vsel %vm1136_vm12, %v2626_v44, %v1135_v53 }
 0x370   : > { %2004 = vrcp.f32 %v1072_v42  ;;  %v2824_v60 = vsel %vm1138_vm15, %v1139_v51, %v1137_v22 }
 0x371   : > { %v2782_v8 = vadd.f32 1e-09, %v1085_v12  ;;  %v2784_v47 = vadd.f32 1e-09, %v1086_v28  ;;  %2006 = vrsqrt.f32 %v2762_v46 }
 0x372   : > { %v1993_v21 = vpop.eup %1992  ;;  %2008 = vrsqrt.f32 %v2770_v58 }
 0x373   : > { %2010 = vrsqrt.f32 %v2782_v8  ;;  %v1089_v9 = vmul.f32 %v1993_v21, %v2533_v15  ;;  %v1090_v55 = vmul.f32 %v1993_v21, %v2535_v20  ;;  %v1995_v15 = vpop.eup %1994  ;;  %v2818_v20 = vsel %vm1131_vm14, %v1132_v30, %v1130_v5 }
 0x374   : > { %2012 = vrsqrt.f32 %v2784_v47  ;;  %v1087_v40 = vmul.f32 %v1995_v15, %v2547_v25  ;;  %v1088_v52 = vmul.f32 %v1995_v15, %v2549_v26  ;;  %v2840_v25 = vsel %vm1159_vm6, %v1160_v27, %v2722_v43 }
 0x375   : > { %v2810_v0 = vadd.f32 1e-09, %v1089_v9  ;;  %v2847_v26 = vsel %vm1166_vm7, %v1167_v33, %v2727_v61  ;;  %v2864_v33 = vsel %vm1173_vm9, %v3241_v24, %v2660_v19  ;;  %v1246_v19 = vand.u32 2147483648, %v2745_v18 }
 0x376   : > { %v1997_v37 = vpop.eup %1996  ;;  %v2851_v54 = vadd.f32 1e-09, %v1087_v40  ;;  %v2853_v44 = vadd.f32 1e-09, %v1088_v52  ;;  %vm1257_vm6 = vcmp.eq.f32.partialorder %v2762_v46, inf  ;;  %vm1259_vm7 = vcmp.eq.f32.partialorder %v2762_v46, 0.0 }
 0x377   : > { %v1999_v38 = vpop.eup %1998  ;;  %v1093_v45 = vmul.f32 %v1997_v37, %v2541_v59  ;;  %v2849_v59 = vadd.f32 1e-09, %v1090_v55  ;;  %2014 = vrsqrt.f32 %v2810_v0  ;;  %v1094_v14 = vmul.f32 %v1997_v37, %v2545_v23 }
 0x378   : > { %v2001_v48 = vpop.eup %2000  ;;  %v1091_v3 = vmul.f32 %v1999_v38, %v2551_v4  ;;  %v1092_v27 = vmul.f32 %v1999_v38, %v2557_v31  ;;  %2016 = vrsqrt.f32 %v2851_v54  ;;  %v3242_v4 = vand.u32 2147483648, %v2583_v41 }
 0x379   : > { %v2003_v13 = vpop.eup %2002  ;;  %2018 = vrsqrt.f32 %v2853_v44  ;;  %v2878_v50 = vadd.f32 1e-09, %v1093_v45  ;;  %v2889_v53 = vadd.f32 1e-09, %v1094_v14  ;;  %vm1266_vm9 = vcmp.eq.f32.partialorder %v2770_v58, 0.0 }
 0x37a   : > { %v2005_v43 = vpop.eup %2004  ;;  %v2867_v61 = vadd.f32 1e-09, %v1091_v3  ;;  %v2874_v23 = vsel %vm1180_vm11, %v3242_v4, %v2668_v32  ;;  %2020 = vrsqrt.f32 %v2849_v59  ;;  %v2883_v2 = vadd.f32 1e-09, %v1092_v27 }
 0x37b   : > { %v2007_v31 = vpop.eup %2006  ;;  %v1095_v41 = vmul.f32 %v2005_v43, %v2561_v34  ;;  %v1253_v32 = vand.u32 2147483648, %v2753_v36  ;;  %v1096_v12 = vmul.f32 %v2005_v43, %v2565_v35  ;;  %v1242_v34 = vmul.f32 %v2001_v48, %v2745_v18 }
 0x37c   : > { %v2009_v17 = vpop.eup %2008  ;;  %2022 = vrsqrt.f32 %v2867_v61  ;;  %v1249_v42 = vmul.f32 %v2003_v13, %v2753_v36  ;;  %v1256_v5 = vmul.f32 %v2007_v31, %v2762_v46  ;;  %v1260_v35 = vand.u32 2147483648, %v2762_v46 }
 0x37d   : > { %v2011_v56 = vpop.eup %2010  ;;  %v2895_v28 = vadd.f32 1e-09, %v1095_v41  ;;  %2024 = vrsqrt.f32 %v2878_v50  ;;  %v2900_v51 = vadd.f32 1e-09, %v1096_v12  ;;  %v1263_v21 = vmul.f32 %v2009_v17, %v2770_v58 }
 0x37e   : > { %v2013_v30 = vpop.eup %2012  ;;  %2026 = vrsqrt.f32 %v2883_v2  ;;  %v1270_v22 = vmul.f32 %v2011_v56, %v2782_v8  ;;  %v1267_v9 = vand.u32 2147483648, %v2770_v58  ;;  %vm1271_vm10 = vcmp.eq.f32.partialorder %v2782_v8, inf }
 0x37f   : > { %2028 = vrsqrt.f32 %v2889_v53  ;;  %v1244_v1 = vsel %vm1243_vm2, %v2745_v18, %v1242_v34  ;;  %v1251_v55 = vsel %vm1250_vm3, %v2753_v36, %v1249_v42  ;;  %v1277_v11 = vmul.f32 %v2013_v30, %v2784_v47 }
 0x380   : > { %2030 = vrsqrt.f32 %v2895_v28  ;;  %v1258_v37 = vsel %vm1257_vm6, %v2762_v46, %v1256_v5  ;;  %vm1273_vm11 = vcmp.eq.f32.partialorder %v2782_v8, 0.0  ;;  %v1274_v40 = vand.u32 2147483648, %v2782_v8 }
 0x381   : > { %v2015_v15 = vpop.eup %2014  ;;  %2032 = vrsqrt.f32 %v2900_v51  ;;  %v1265_v38 = vsel %vm1264_vm8, %v2770_v58, %v1263_v21  ;;  %v1272_v45 = vsel %vm1271_vm10, %v2782_v8, %v1270_v22  ;;  %vm1278_vm12 = vcmp.eq.f32.partialorder %v2784_v47, inf }
 0x382   : > { %v2017_v52 = vpop.eup %2016  ;;  %vm1280_vm13 = vcmp.eq.f32.partialorder %v2784_v47, 0.0  ;;  %v1330_v3 = vand.u32 2147483648, %v2878_v50  ;;  %v1337_v13 = vand.u32 2147483648, %v2889_v53  ;;  %v2936_v14 = vsel %vm1245_vm4, %v1246_v19, %v1244_v1 }
 0x383   : > { %v2019_v48 = vpop.eup %2018  ;;  %v2940_v27 = vsel %vm1252_vm5, %v1253_v32, %v1251_v55  ;;  %v1344_v43 = vand.u32 2147483648, %v2895_v28  ;;  %v1351_v4 = vand.u32 2147483648, %v2900_v51  ;;  %v1261_v31 = vsel %vm1259_vm7, %v1260_v35, %v1258_v37 }
 0x384   : > { %v2021_v24 = vpop.eup %2020  ;;  %v1279_v17 = vsel %vm1278_vm12, %v2784_v47, %v1277_v11  ;;  %v1268_v41 = vsel %vm1266_vm9, %v1267_v9, %v1265_v38  ;;  %v1275_v18 = vsel %vm1273_vm11, %v1274_v40, %v1272_v45  ;;  %v1281_v36 = vand.u32 2147483648, %v2784_v47 }
 0x385   : > { %v1284_v19 = vmul.f32 %v2017_v52, %v2851_v54  ;;  %vm1327_vm14 = vcmp.eq.f32.partialorder %v2878_v50, inf  ;;  %vm1285_vm15 = vcmp.eq.f32.partialorder %v2851_v54, inf  ;;  %vm1287_vm0 = vcmp.eq.f32.partialorder %v2851_v54, 0.0 }
 0x386   : > { %v2023_v32 = vpop.eup %2022  ;;  %v1291_v46 = vmul.f32 %v2019_v48, %v2853_v44  ;;  %v1298_v56 = vmul.f32 %v2015_v15, %v2810_v0  ;;  %v1282_v8 = vsel %vm1280_vm13, %v1281_v36, %v1279_v17  ;;  %v1288_v34 = vand.u32 2147483648, %v2851_v54 }
 0x387   : > { %v2025_v58 = vpop.eup %2024  ;;  %v1312_v12 = vmul.f32 %v2023_v32, %v2867_v61  ;;  %v1305_v42 = vmul.f32 %v2021_v24, %v2849_v59  ;;  %vm1334_vm1 = vcmp.eq.f32.partialorder %v2889_v53, inf  ;;  %vm1292_vm2 = vcmp.eq.f32.partialorder %v2853_v44, inf }
 0x388   : > { %v2027_v30 = vpop.eup %2026  ;;  %vm1294_vm3 = vcmp.eq.f32.partialorder %v2853_v44, 0.0  ;;  %v1295_v5 = vand.u32 2147483648, %v2853_v44  ;;  %vm1299_vm4 = vcmp.eq.f32.partialorder %v2810_v0, inf  ;;  %vm1341_vm5 = vcmp.eq.f32.partialorder %v2895_v28, inf }
 0x389   : > { %v2029_v35 = vpop.eup %2028  ;;  %vm1348_vm6 = vcmp.eq.f32.partialorder %v2900_v51, inf  ;;  %v1286_v47 = vsel %vm1285_vm15, %v2851_v54, %v1284_v19  ;;  %vm1301_vm7 = vcmp.eq.f32.partialorder %v2810_v0, 0.0  ;;  %v1302_v21 = vand.u32 2147483648, %v2810_v0 }
 0x38a   : > { %vm1306_vm8 = vcmp.eq.f32.partialorder %v2849_v59, inf  ;;  %v2031_v22 = vpop.eup %2030  ;;  %v1326_v9 = vmul.f32 %v2025_v58, %v2878_v50  ;;  %v1293_v1 = vsel %vm1292_vm2, %v2853_v44, %v1291_v46  ;;  %v1300_v55 = vsel %vm1299_vm4, %v2810_v0, %v1298_v56 }
 0x38b   : > { %vm1313_vm9 = vcmp.eq.f32.partialorder %v2867_v61, inf  ;;  %v2033_v11 = vpop.eup %2032  ;;  %v1319_v15 = vmul.f32 %v2027_v30, %v2883_v2  ;;  %v1307_v37 = vsel %vm1306_vm8, %v2849_v59, %v1305_v42  ;;  %vm1308_vm10 = vcmp.eq.f32.partialorder %v2849_v59, 0.0 }
 0x38c   : > { %v1314_v40 = vsel %vm1313_vm9, %v2867_v61, %v1312_v12  ;;  %v1333_v52 = vmul.f32 %v2029_v35, %v2889_v53  ;;  %vm1343_vm11 = vcmp.eq.f32.partialorder %v2895_v28, 0.0  ;;  %vm1350_vm12 = vcmp.eq.f32.partialorder %v2900_v51, 0.0 }
 0x38d   : > { %v1289_v38 = vsel %vm1287_vm0, %v1288_v34, %v1286_v47  ;;  %v1309_v45 = vand.u32 2147483648, %v2849_v59  ;;  %v1316_v48 = vand.u32 2147483648, %v2867_v61  ;;  %v1340_v24 = vmul.f32 %v2031_v22, %v2895_v28 }
 0x38e   : > { %v1296_v17 = vsel %vm1294_vm3, %v1295_v5, %v1293_v1  ;;  %v1303_v36 = vsel %vm1301_vm7, %v1302_v21, %v1300_v55  ;;  %vm1315_vm13 = vcmp.eq.f32.partialorder %v2867_v61, 0.0  ;;  %v1347_v19 = vmul.f32 %v2033_v11, %v2900_v51 }
 0x38f   : > { %v1310_v32 = vsel %vm1308_vm10, %v1309_v45, %v1307_v37  ;;  %v1317_v46 = vsel %vm1315_vm13, %v1316_v48, %v1314_v40  ;;  %vm1320_vm15 = vcmp.eq.f32.partialorder %v2883_v2, inf  ;;  %vm1322_vm0 = vcmp.eq.f32.partialorder %v2883_v2, 0.0 }
 0x390   : > { %v1321_v59 = vsel %vm1320_vm15, %v2883_v2, %v1319_v15  ;;  %v1328_v54 = vsel %vm1327_vm14, %v2878_v50, %v1326_v9  ;;  %v1353_v0 = vmul.f32 %v2936_v14, %v2802_v7  ;;  %v1323_v44 = vand.u32 2147483648, %v2883_v2 }
 0x391   : > { %v1355_v61 = vmul.f32 %v1261_v31, %v2818_v20  ;;  %v1356_v56 = vmul.f32 %v1268_v41, %v2824_v60  ;;  %v1357_v58 = vmul.f32 %v1275_v18, %v2828_v6  ;;  %vm1329_vm2 = vcmp.eq.f32.partialorder %v2878_v50, 0.0 }
 0x392   : > { %v1335_v12 = vsel %vm1334_vm1, %v2889_v53, %v1333_v52  ;;  %v1354_v34 = vmul.f32 %v2940_v27, %v2814_v10  ;;  %v1358_v42 = vmul.f32 %v1282_v8, %v2833_v39  ;;  %v1342_v7 = vsel %vm1341_vm5, %v2895_v28, %v1340_v24 }
 0x393   : > { %v1349_v20 = vsel %vm1348_vm6, %v2900_v51, %v1347_v19  ;;  %v1331_v60 = vsel %vm1329_vm2, %v1330_v3, %v1328_v54  ;;  %v1359_v6 = vmul.f32 %v1289_v38, %v2840_v25  ;;  %v1324_v2 = vsel %vm1322_vm0, %v1323_v44, %v1321_v59 }
 0x394   : > { %vm1336_vm14 = vcmp.eq.f32.partialorder %v2889_v53, 0.0  ;;  %v1360_v10 = vmul.f32 %v1296_v17, %v2847_v26  ;;  %v3028_v14 = vadd.f32 -1e-09, %v1353_v0  ;;  %v3032_v27 = vadd.f32 -1e-09, %v1355_v61 }
 0x395   : > { %v1338_v39 = vsel %vm1336_vm14, %v1337_v13, %v1335_v12  ;;  %v3034_v31 = vadd.f32 -1e-09, %v1356_v56  ;;  %v3036_v41 = vadd.f32 -1e-09, %v1357_v58  ;;  %v1345_v25 = vsel %vm1343_vm11, %v1344_v43, %v1342_v7 }
 0x396   : > { %v1352_v26 = vsel %vm1350_vm12, %v1351_v4, %v1349_v20  ;;  %v3046_v50 = vadd.f32 -1e-09, %v1354_v34  ;;  %v3048_v53 = vadd.f32 -1e-09, %v1358_v42  ;;  %v1361_v3 = vmul.f32 %v1303_v36, %v2864_v33 }
 0x397   : > { %v1362_v13 = vmul.f32 %v1310_v32, %v2874_v23  ;;  %v1363_v18 = vmul.f32 %v1317_v46, %v2687_v63  ;;  %v3053_v8 = vadd.f32 -1e-09, %v1359_v6  ;;  %v1364_v28 = vmul.f32 %v1324_v2, %v2705_v16 }
 0x398   : > { %v1365_v43 = vmul.f32 %v1331_v60, %v2733_v62  ;;  %v3057_v30 = vadd.f32 -1e-09, %v1360_v10  ;;  %v1385_v51 = vand.u32 2147483647, %v3028_v14  ;;  %v1366_v4 = vmul.f32 %v1338_v39, %v2737_v49 }
 0x399   : > { %v1387_v5 = vand.u32 2147483647, %v3032_v27  ;;  %v1388_v33 = vand.u32 2147483647, %v3034_v31  ;;  %v1389_v23 = vand.u32 2147483647, %v3036_v41  ;;  %v1367_v63 = vmul.f32 %v1345_v25, %v2743_v57 }
 0x39a   : > { %v1368_v35 = vmul.f32 %v1352_v26, %v2751_v29  ;;  %v1386_v16 = vand.u32 2147483647, %v3046_v50  ;;  %v1390_v62 = vand.u32 2147483647, %v3048_v53  ;;  %v3068_v47 = vadd.f32 -1e-09, %v1361_v3 }
 0x39b   : > { %v1700_v21 = vadd.f32 -1e-09, %v1363_v18  ;;  %v1391_v22 = vand.u32 2147483647, %v3053_v8  ;;  %v1401_v49 = vadd.f32 %v1387_v5, %v1385_v51  ;;  %v3071_v9 = vadd.f32 -1e-09, %v1362_v13 }
 0x39c   : > { %v1701_v1 = vadd.f32 -1e-09, %v1364_v28  ;;  %v1392_v55 = vand.u32 2147483647, %v3057_v30  ;;  %v1414_v11 = vadd.f32 %v1388_v33, %v1386_v16  ;;  %v3074_v57 = vadd.f32 -1e-09, %v1365_v43 }
 0x39d   : > { %v1402_v15 = vadd.f32 %v1401_v49, %v1389_v23  ;;  %v3076_v29 = vadd.f32 -1e-09, %v1366_v4  ;;  %v1704_v40 = vadd.f32 -1e-09, %v1367_v63  ;;  %v1393_v52 = vand.u32 2147483647, %v3068_v47 }
 0x39e   : > { %v1415_v37 = vadd.f32 %v1414_v11, %v1390_v62  ;;  %v1395_v38 = vand.u32 2147483647, %v1700_v21  ;;  %v1705_v48 = vadd.f32 -1e-09, %v1368_v35  ;;  %v1394_v24 = vand.u32 2147483647, %v3071_v9 }
 0x39f   : > { %v1403_v45 = vadd.f32 %v1402_v15, %v1391_v22  ;;  %v1396_v17 = vand.u32 2147483647, %v1701_v1  ;;  %v1397_v46 = vand.u32 2147483647, %v3074_v57  ;;  %v1399_v59 = vand.u32 2147483647, %v1704_v40 }
 0x3a0   : > { %v1416_v36 = vadd.f32 %v1415_v37, %v1392_v55  ;;  %v1398_v0 = vand.u32 2147483647, %v3076_v29  ;;  %v1400_v44 = vand.u32 2147483647, %v1705_v48 }
 0x3a1   : > { %v1404_v19 = vadd.f32 %v1403_v45, %v1393_v52 }
 0x3a2   : > { %v1417_v32 = vadd.f32 %v1416_v36, %v1394_v24 }
 0x3a3   : > { %v1405_v54 = vadd.f32 %v1404_v19, %v1395_v38 }
 0x3a4   : > { %v1418_v61 = vadd.f32 %v1417_v32, %v1396_v17 }
 0x3a5   : > { %v1406_v56 = vadd.f32 %v1405_v54, %v1397_v46 }
 0x3a6   : > { %v1419_v58 = vadd.f32 %v1418_v61, %v1398_v0 }
 0x3a7   : > { %v1407_v12 = vadd.f32 %v1406_v56, %v1399_v59 }
 0x3a8   : > { %v1420_v34 = vadd.f32 %v1419_v58, %v1400_v44 }
 0x3a9   : > { %v1408_v42 = vrot.slane %v1407_v12, 4 }
 0x3aa   : > { %v1421_v7 = vrot.slane %v1420_v34, 4 }
 0x3ab   : > { %v1409_v20 = vadd.f32 %v1408_v42, %v1407_v12 }
 0x3ac   : > { %v1422_v60 = vadd.f32 %v1421_v7, %v1420_v34 }
 0x3ad   : > { %v1410_v6 = vrot.slane %v1409_v20, 2 }
 0x3ae   : > { %v1423_v2 = vrot.slane %v1422_v60, 2 }
 0x3af   : > { %v1411_v10 = vadd.f32 %v1410_v6, %v1409_v20 }
 0x3b0   : > { %v1424_v39 = vadd.f32 %v1423_v2, %v1422_v60 }
 0x3b1   : > { %v1412_v25 = vrot.slane %v1411_v10, 1 }
 0x3b2   : > { %v1425_v26 = vrot.slane %v1424_v39, 1 }
 0x3b3   : > { %v1413_v3 = vadd.f32 %v1412_v25, %v1411_v10 }
 0x3b4   : > { %v1426_v13 = vadd.f32 %v1425_v26, %v1424_v39 }
 0x3b5   : > { %v1427_v18 = vmax.f32 %v1413_v3, 1e-12 }
 0x3b6   : > { %v1428_v28 = vmax.f32 %v1426_v13, 1e-12 }
 0x3b7   : > { %2034 = vrcp.f32 %v1427_v18 }
 0x3b8   : > { %2036 = vrcp.f32 %v1428_v28 }
 0x3c1   : > { %v2035_v43 = vpop.eup %2034 }
 0x3c2   : > { %v2037_v51 = vpop.eup %2036  ;;  %v3083_v4 = vmul.f32 %v2035_v43, %v3032_v27  ;;  %v3086_v5 = vmul.f32 %v2035_v43, %v3028_v14  ;;  %v3089_v33 = vmul.f32 %v2035_v43, %v3053_v8  ;;  %v3092_v23 = vmul.f32 %v2035_v43, %v3036_v41 }
 0x3c3   : > { %v3095_v63 = vmul.f32 %v2037_v51, %v3034_v31  ;;  %v3098_v35 = vmul.f32 %v2037_v51, %v3046_v50  ;;  %v3101_v16 = vmul.f32 %v2037_v51, %v3057_v30  ;;  %v3104_v27 = vmul.f32 %v2037_v51, %v3048_v53 }
 0x3c4   : > { %v1449_v14 = vand.u32 2147483647, %v3083_v4  ;;  %v1447_v8 = vand.u32 2147483647, %v3086_v5  ;;  %v3108_v62 = vmul.f32 %v2035_v43, %v1700_v21  ;;  %v3112_v22 = vmul.f32 %v2037_v51, %v1701_v1 }
 0x3c5   : > { %v1450_v41 = vand.u32 2147483647, %v3095_v63  ;;  %v1448_v31 = vand.u32 2147483647, %v3098_v35  ;;  %v1453_v50 = vand.u32 2147483647, %v3089_v33  ;;  %v3117_v49 = vmul.f32 %v2035_v43, %v3068_v47 }
 0x3c6   : > { %v1454_v30 = vand.u32 2147483647, %v3101_v16  ;;  %v1451_v11 = vand.u32 2147483647, %v3092_v23  ;;  %v1452_v21 = vand.u32 2147483647, %v3104_v27  ;;  %v3122_v15 = vmul.f32 %v2037_v51, %v3071_v9 }
 0x3c7   : > { %v1466_v53 = vadd.f32 %v1450_v41, %v1449_v14  ;;  %v1463_v55 = vadd.f32 %v1448_v31, %v1447_v8  ;;  %v3124_v37 = vmul.f32 %v2035_v43, %v1704_v40  ;;  %v3126_v1 = vmul.f32 %v2037_v51, %v1705_v48 }
 0x3c8   : > { %v3129_v52 = vmul.f32 %v2035_v43, %v3074_v57  ;;  %v1457_v47 = vand.u32 2147483647, %v3108_v62  ;;  %v1458_v38 = vand.u32 2147483647, %v3112_v22  ;;  %v3134_v45 = vmul.f32 %v2037_v51, %v3076_v29 }
 0x3c9   : > { %1467 = vadd.xlane.f32.xlu1 %v1466_v53  ;;  %1464 = vadd.xlane.f32.xlu0 %v1463_v55  ;;  %v1472_v24 = vadd.f32 %v1454_v30, %v1453_v50  ;;  %v1469_v17 = vadd.f32 %v1452_v21, %v1451_v11  ;;  %v1455_v9 = vand.u32 2147483647, %v3117_v49  ;;  %v1456_v40 = vand.u32 2147483647, %v3122_v15 }
 0x3ca   : > { %v1478_v48 = vadd.f32 %v1458_v38, %v1457_v47  ;;  %v1461_v36 = vand.u32 2147483647, %v3124_v37  ;;  %v1462_v19 = vand.u32 2147483647, %v3126_v1  ;;  %v1459_v32 = vand.u32 2147483647, %v3129_v52 }
 0x3cb   : > { %v1475_v57 = vadd.f32 %v1456_v40, %v1455_v9  ;;  %v1460_v46 = vand.u32 2147483647, %v3134_v45 }
 0x3cc   : > { %v1484_v29 = vadd.f32 %v1462_v19, %v1461_v36 }
 0x3cd   : > { %1473 = vadd.xlane.f32.xlu1 %v1472_v24  ;;  %1470 = vadd.xlane.f32.xlu0 %v1469_v17  ;;  %v1481_v59 = vadd.f32 %v1460_v46, %v1459_v32 }
 0x3d1   : > { %1479 = vadd.xlane.f32.xlu1 %v1478_v48  ;;  %1476 = vadd.xlane.f32.xlu0 %v1475_v57 }
 0x3d5   : > { %1485 = vadd.xlane.f32.xlu1 %v1484_v29  ;;  %1482 = vadd.xlane.f32.xlu0 %v1481_v59 }
 0x456   : > { %v1468_v54 = vpop.xlane.xlu1 %1467  ;;  %v1465_v0 = vpop.xlane.xlu0 %1464 }
 0x457   : > { %v1488_v44 = vmax.f32 %v1468_v54, 1e-12  ;;  %v1487_v61 = vmax.f32 %v1465_v0, 1e-12 }
 0x459   : > { %2038 = vrcp.f32 %v1488_v44 }
 0x45a   : > { %2040 = vrcp.f32 %v1487_v61  ;;  %v1474_v56 = vpop.xlane.xlu1 %1473  ;;  %v1471_v58 = vpop.xlane.xlu0 %1470 }
 0x45b   : > { %v1490_v12 = vmax.f32 %v1474_v56, 1e-12  ;;  %v1489_v34 = vmax.f32 %v1471_v58, 1e-12 }
 0x45d   : > { %2042 = vrcp.f32 %v1490_v12 }
 0x45e   : > { %2044 = vrcp.f32 %v1489_v34  ;;  %v1480_v42 = vpop.xlane.xlu1 %1479  ;;  %v1477_v7 = vpop.xlane.xlu0 %1476 }
 0x45f   : > { %v1492_v20 = vmax.f32 %v1480_v42, 1e-12  ;;  %v1491_v60 = vmax.f32 %v1477_v7, 1e-12 }
 0x461   : > { %2046 = vrcp.f32 %v1492_v20 }
 0x462   : > { %2048 = vrcp.f32 %v1491_v60  ;;  %v1486_v6 = vpop.xlane.xlu1 %1485  ;;  %v1483_v2 = vpop.xlane.xlu0 %1482 }
 0x463   : > { %v2039_v10 = vpop.eup %2038  ;;  %v1494_v39 = vmax.f32 %v1486_v6, 1e-12  ;;  %v1493_v25 = vmax.f32 %v1483_v2, 1e-12 }
 0x464   : > { %v2041_v26 = vpop.eup %2040  ;;  %v1505_v3 = vmul.f32 %v2039_v10, %v3083_v4  ;;  %v1506_v13 = vmul.f32 %v2039_v10, %v3095_v63 }
 0x465   : > { %v1503_v18 = vmul.f32 %v2041_v26, %v3086_v5  ;;  %v1504_v28 = vmul.f32 %v2041_v26, %v3098_v35  ;;  %2050 = vrcp.f32 %v1494_v39 }
 0x466   : > { %1521 = vst [vmem:[%s3149_s16 + $0x10] sm:$0xff] %v1505_v3  ;;  %1522 = vst [vmem:[%s3149_s16 + $0x18] sm:$0xff] %v1506_v13  ;;  %2052 = vrcp.f32 %v1493_v25 }
 0x467   : > { %v2043_v43 = vpop.eup %2042  ;;  %1519 = vst [vmem:[%s3149_s16] sm:$0xff] %v1503_v18  ;;  %1520 = vst [vmem:[%s3149_s16 + $0x8] sm:$0xff] %v1504_v28 }
 0x468   : > { %v2045_v51 = vpop.eup %2044  ;;  %v1509_v4 = vmul.f32 %v2043_v43, %v3089_v33  ;;  %v1510_v5 = vmul.f32 %v2043_v43, %v3101_v16 }
 0x469   : > { %v1507_v63 = vmul.f32 %v2045_v51, %v3092_v23  ;;  %v1508_v35 = vmul.f32 %v2045_v51, %v3104_v27 }
 0x46a   : > { %1525 = vst [vmem:[%s3149_s16 + $0x30] sm:$0xff] %v1509_v4  ;;  %1526 = vst [vmem:[%s3149_s16 + $0x38] sm:$0xff] %v1510_v5 }
 0x46b   : > { %v2047_v14 = vpop.eup %2046  ;;  %1523 = vst [vmem:[%s3149_s16 + $0x20] sm:$0xff] %v1507_v63  ;;  %1524 = vst [vmem:[%s3149_s16 + $0x28] sm:$0xff] %v1508_v35 }
 0x46c   : > { %v2049_v8 = vpop.eup %2048  ;;  %v1513_v41 = vmul.f32 %v2047_v14, %v3108_v62  ;;  %v1514_v33 = vmul.f32 %v2047_v14, %v3112_v22 }
 0x46d   : > { %v1511_v31 = vmul.f32 %v2049_v8, %v3117_v49  ;;  %v1512_v16 = vmul.f32 %v2049_v8, %v3122_v15 }
 0x46e   : > { %1529 = vst [vmem:[%s3149_s16 + $0x50] sm:$0xff] %v1513_v41  ;;  %1530 = vst [vmem:[%s3149_s16 + $0x58] sm:$0xff] %v1514_v33 }
 0x46f   : > { %v2051_v23 = vpop.eup %2050  ;;  %1527 = vst [vmem:[%s3149_s16 + $0x40] sm:$0xff] %v1511_v31  ;;  %1528 = vst [vmem:[%s3149_s16 + $0x48] sm:$0xff] %v1512_v16 }
 0x470   : > { %v2053_v27 = vpop.eup %2052  ;;  %v1517_v62 = vmul.f32 %v2051_v23, %v3124_v37  ;;  %v1518_v22 = vmul.f32 %v2051_v23, %v3126_v1 }
 0x471   : > { %v1515_v50 = vmul.f32 %v2053_v27, %v3129_v52  ;;  %v1516_v30 = vmul.f32 %v2053_v27, %v3134_v45 }
 0x472   : > { %1533 = vst [vmem:[%s3149_s16 + $0x70] sm:$0xff] %v1517_v62  ;;  %1534 = vst [vmem:[%s3149_s16 + $0x78] sm:$0xff] %v1518_v22 }
 0x473   : > { %1531 = vst [vmem:[%s3149_s16 + $0x60] sm:$0xff] %v1515_v50  ;;  %1532 = vst [vmem:[%s3149_s16 + $0x68] sm:$0xff] %v1516_v30 }
 0x474   : > { %2067 = shalt.err (!%p2064_p3)
}
 0x475   : > { %s2068_s13 = scalar_lea.hbm %s3178_s21, 2048  ;;  %s2072_s15 = scalar_lea.hbm %s3238_s7, 4096 }
 0x476   : > { %p2069_p4 = scmp.ne.s32.totalorder %s3178_s21, %s2068_s13  ;;  %p2073_p9 = scmp.lt.u32.totalorder %s3178_s21, %s3238_s7 }
 0x477   : > { %p2074_p10 = scmp.lt.u32.totalorder %s2072_s15, %s2068_s13  ;;  %p2076_p12 = scmp.lt.u32.totalorder %s2068_s13, %s3178_s21 }
 0x478   : > { %p2070_p7 = pnand %p2069_p4, %p2199_p5 }
 0x479   : > { %p2075_p11 = por %p2074_p10, %p2073_p9 }
 0x47a   : > { %p2071_p8 = pneg %p2070_p7 }
 0x47b   : > { %p2077_p13 = por %p2076_p12, %p2075_p11 }
 0x47d   : > { %p2078_p0 = pnand %p2077_p13, %p2071_p8 }
 0x47f   : > { %2081 = shalt.err (!%p2078_p0)
}
 0x480   : > { %s2119_s19 = smov 256   ;;  %s2120_s20 = smov 16  }
 0x481   : > { %1881 = dma.vmem_to_hbm [thread:$0]  (%p2199_p5), %s3180_s18, 2048, %s3178_s21, %s3190_s28, %s2119_s19, %s2119_s19, %s2120_s20  }
 0x482 PF: > { %p1887_p1 = scmp.ge.s32.totalorder %s2116_s27, 2  ;;  %s1564_s22 = sand.u32 1, %s2104_s24  }
 0x483   : > { %s1565_s29 = scalar_lea.sflag [#allocation3], %s1564_s22 }
 0x484   : > { %p1884_p2 = pnand %p1887_p1, %p2203_p6 }
 0x486   : > { %2099 = dma.done.wait (!%p1884_p2), %s1565_s29, 2048  }
 0x487   : > { %2101 = vsyncadd (!%p1884_p2), %s1565_s29, 4294965248  ;;  %p17_p3 = scmp.ge.s32.totalorder %s2186_s30, 4   ;;  %s3243_s24 = smov %s2108_s25 }
 0x488   : > { %s3244_s25 = smov %s2112_s26  ;;  %s3245_s26 = smov %s2197_s10 }
 0x489   : > { %s3246_s27 = smov %s2186_s30  ;;  %19 = sbr.rel (!%p17_p3) target bundleno = 3 (0x3), region = 89 }
 0x490   :  { %1570 = vsyncpa [#allocation3], 1 }
 0x491   :  { %1572 = vsyncpa [#allocation3 + $0x1], 1 }

</bundles_post_ra>
